<compile_context>
chip_gen: v7x
topology: tpu7x:2x2x1
jax: 0.10.0
libtpu: 0.0.40
codegen_flags: <defaults>
</compile_context>

<pallas_src>
import functools
import math

import jax
import jax.numpy as jnp
from jax import lax
from jax.experimental import pallas as pl
from jax.experimental.pallas import tpu as pltpu


def _round_up(x, m):
    return (x + m - 1) // m * m


def _choose_time_chunk(T, cap=64):
    """Large time chunk (amortizes ~0.35us/grid-step), rebalanced to minimize padding."""
    tt = min(cap, T)
    nt = -(-T // tt)
    return -(-T // nt)


def _pad_gate_cols(w2d, H, Hs):
    """(rows, 3*H) with [r|z|n] column blocks -> (rows, 3*Hs), zero-padded per gate."""
    rows = w2d.shape[0]
    w3 = w2d.reshape(rows, 3, H)
    w3 = jnp.pad(w3, ((0, 0), (0, 0), (0, Hs - H)))
    return w3.reshape(rows, 3 * Hs)


# -----------------------------------------------------------------------------
# Fused kernel: L-layer GRU recurrence over a time chunk + linear head + tanh.
# Grid = (batch_tiles, time_chunks); hidden state lives in the constant-index
# hn output block (VMEM-resident per batch tile) and is carried as fori_loop
# values inside a chunk.
# -----------------------------------------------------------------------------
def fused_gru_head_kernel(*refs, num_layers, gate_stride, out_pad, n_gaussian,
                          time_chunk, batch_tile, seq_len, seq_len_padded,
                          compute_dtype):
    L, Hs, Op, TT, BT = num_layers, gate_stride, out_pad, time_chunk, batch_tile

    x_ref = refs[0]                                # (TT, BT, D) time x batch chunk
    layer_refs = refs[1:1 + 4 * L]                 # [W_ih^T, W_hh^T, b_ih, b_hh] * L
    h0_ref, wlin_ref, blin_ref = refs[1 + 4 * L:4 + 4 * L]
    out_ref = refs[4 + 4 * L]                      # (TT, BT, Op)  head output
    hn_ref = refs[5 + 4 * L]                       # (L, BT, Hs)   hidden carrier
    gi_scr = refs[6 + 4 * L]                       # (TT, BT, 3Hs) layer-0 pre-acts
    acc_scr = refs[7 + 4 * L]                      # (TT, BT, Hs)  top-layer hiddens

    t_chunk = pl.program_id(1)

    # First time chunk of each batch tile: seed the resident hidden accumulator.
    @pl.when(t_chunk == 0)
    def _():
        hn_ref[...] = h0_ref[...]

    # ---- Hoisted layer-0 input projection: ONE matmul for the whole chunk. ----
    D = x_ref.shape[-1]
    x2d = x_ref[...].reshape(TT * BT, D)
    gi0 = (jnp.dot(x2d, layer_refs[0][...], preferred_element_type=jnp.float32)
           + layer_refs[2][...])
    gi_scr[...] = gi0.reshape(TT, BT, 3 * Hs)

    def gru_cell(gi, h_prev, whh_ref, bhh_ref):
        gh = jnp.dot(h_prev.astype(compute_dtype), whh_ref[...],
                     preferred_element_type=jnp.float32) + bhh_ref[...]
        r = jax.nn.sigmoid(gi[:, 0:Hs] + gh[:, 0:Hs])
        z = jax.nn.sigmoid(gi[:, Hs:2 * Hs] + gh[:, Hs:2 * Hs])
        n = jnp.tanh(gi[:, 2 * Hs:3 * Hs] + r * gh[:, 2 * Hs:3 * Hs])
        return (1.0 - z) * n + z * h_prev          # gate math stays float32

    def step(t, hs):
        new = [None] * L
        new[0] = gru_cell(gi_scr[t], hs[0], layer_refs[1], layer_refs[3])
        for l in range(1, L):
            gi_l = (jnp.dot(new[l - 1].astype(compute_dtype),
                            layer_refs[4 * l + 0][...],
                            preferred_element_type=jnp.float32)
                    + layer_refs[4 * l + 2][...])
            new[l] = gru_cell(gi_l, hs[l],
                              layer_refs[4 * l + 1], layer_refs[4 * l + 3])
        if seq_len_padded != seq_len:              # mask padded tail time steps
            valid = (t_chunk * TT + t) < seq_len
            new = [jnp.where(valid, new[l], hs[l]) for l in range(L)]
        acc_scr[t] = new[L - 1]
        return tuple(new)

    # Partial unroll for large chunks; full unroll only for small ones.
    unroll = True if TT <= 8 else 8
    h_final = lax.fori_loop(0, TT, step,
                            tuple(hn_ref[l] for l in range(L)), unroll=unroll)
    for l in range(L):
        hn_ref[l] = h_final[l]

    # ---- Fused linear head (+ tanh on rho columns), lane-dense Op output. ----
    feats = acc_scr[...].reshape(TT * BT, Hs)
    y = (jnp.dot(feats.astype(compute_dtype), wlin_ref[...],
                 preferred_element_type=jnp.float32) + blin_ref[...])
    cols = lax.broadcasted_iota(jnp.int32, (1, Op), 1)          # hoisted mask
    rho_mask = (cols >= 4 * n_gaussian) & (cols < 5 * n_gaussian)
    y = jnp.where(rho_mask, jnp.tanh(y), y)
    out_ref[...] = y.reshape(TT, BT, Op).astype(out_ref.dtype)


# -----------------------------------------------------------------------------
# Wrapper: padding / layout plumbing + the single pallas_call.
# -----------------------------------------------------------------------------
def gaussian_writing_gru_forward(params, x, hidden=None, *, n_gaussian, input_size,
                                 compute_dtype=jnp.bfloat16, time_chunk=None,
                                 batch_tile=None):
    T, B, D = x.shape
    L = len(params["w_ih_t"])
    H = params["w_hh_t"][0].shape[0]
    n_output = (1 if input_size == 3 else 2) + 6 * n_gaussian

    # Gate/hidden stride: small-H fast path keeps the 3 gates packed into 3H
    # lanes (no per-gate padding); H multiple of 128 needs no padding either.
    Hs = H if (H % 128 == 0 or 3 * H <= 128) else _round_up(H, 128)
    Op = _round_up(n_output, 128)                 # lane-dense head output
    if batch_tile is None:
        BT = _round_up(B, 8)                      # one tile (safe on 1-TC chips)
    else:
        BT = _round_up(min(batch_tile, _round_up(B, 8)), 8)
    Bp = _round_up(B, BT)
    TT = _choose_time_chunk(T) if time_chunk is None else int(time_chunk)
    nt = -(-T // TT)
    T_pad = nt * TT

    if hidden is None:
        hidden = jnp.zeros((L, B, H), jnp.float32)

    # Zero padding keeps padded batch rows / hidden lanes / tail steps inert.
    x_p = jnp.zeros((T_pad, Bp, D), compute_dtype).at[:T, :B, :].set(
        x.astype(compute_dtype))
    h0_p = jnp.zeros((L, Bp, Hs), jnp.float32).at[:, :B, :H].set(
        hidden.astype(jnp.float32))

    kernel_args = [x_p]
    in_specs = [pl.BlockSpec((TT, BT, D), lambda b, i: (i, b, 0))]
    for l in range(L):
        wih = _pad_gate_cols(params["w_ih_t"][l], H, Hs)
        whh = _pad_gate_cols(params["w_hh_t"][l], H, Hs)
        bih = _pad_gate_cols(params["b_ih"][l].reshape(1, 3 * H), H, Hs)
        bhh = _pad_gate_cols(params["b_hh"][l].reshape(1, 3 * H), H, Hs)
        if l > 0:                                  # layer l>0 consumes padded hidden
            wih = jnp.pad(wih, ((0, Hs - H), (0, 0)))
        whh = jnp.pad(whh, ((0, Hs - H), (0, 0)))
        d_in = wih.shape[0]
        kernel_args += [wih.astype(compute_dtype), whh.astype(compute_dtype), bih, bhh]
        in_specs += [pl.BlockSpec((d_in, 3 * Hs), lambda b, i: (0, 0)),
                     pl.BlockSpec((Hs, 3 * Hs), lambda b, i: (0, 0)),
                     pl.BlockSpec((1, 3 * Hs), lambda b, i: (0, 0)),
                     pl.BlockSpec((1, 3 * Hs), lambda b, i: (0, 0))]

    wlin = jnp.zeros((Hs, Op), jnp.float32).at[:H, :n_output].set(params["lin_w_t"])
    blin = jnp.zeros((1, Op), jnp.float32).at[0, :n_output].set(params["lin_b"])
    kernel_args += [h0_p, wlin.astype(compute_dtype), blin]
    in_specs += [pl.BlockSpec((L, BT, Hs), lambda b, i: (0, b, 0)),
                 pl.BlockSpec((Hs, Op), lambda b, i: (0, 0)),
                 pl.BlockSpec((1, Op), lambda b, i: (0, 0))]

    # Explicit scoped-VMEM budget: double-buffered blocks + resident weights +
    # scratch, with margin, clamped to v7x's 64 MiB physical VMEM.
    csz = jnp.dtype(compute_dtype).itemsize
    weight_bytes = sum(int(a.size) * a.dtype.itemsize for a in kernel_args[1:])
    block_bytes = (2 * TT * BT * D * csz + 2 * TT * BT * Op * 4
                   + 4 * L * BT * Hs * 4 + TT * BT * 4 * Hs * 4)
    vmem_limit = max(32 * 1024 * 1024,
                     min(int(1.5 * (2 * weight_bytes + block_bytes)) + (2 << 20),
                         64 * 1024 * 1024))

    kernel = functools.partial(
        fused_gru_head_kernel, num_layers=L, gate_stride=Hs, out_pad=Op,
        n_gaussian=n_gaussian, time_chunk=TT, batch_tile=BT,
        seq_len=T, seq_len_padded=T_pad, compute_dtype=compute_dtype)

    out_p, hn_p = pl.pallas_call(
        kernel,
        out_shape=(jax.ShapeDtypeStruct((T_pad, Bp, Op), jnp.float32),
                   jax.ShapeDtypeStruct((L, Bp, Hs), jnp.float32)),
        grid_spec=pltpu.PrefetchScalarGridSpec(
            num_scalar_prefetch=0,
            grid=(Bp // BT, nt),
            in_specs=in_specs,
            out_specs=[pl.BlockSpec((TT, BT, Op), lambda b, i: (i, b, 0)),
                       pl.BlockSpec((L, BT, Hs), lambda b, i: (0, b, 0))],
            scratch_shapes=[pltpu.VMEM((TT, BT, 3 * Hs), jnp.float32),
                            pltpu.VMEM((TT, BT, Hs), jnp.float32)]),
        input_output_aliases={4 * L + 1: 1},       # donate h0 buffer to hn output
        compiler_params=pltpu.CompilerParams(
            dimension_semantics=("parallel", "arbitrary"),
            vmem_limit_bytes=vmem_limit),
    )(*kernel_args)

    # Strip padding and reproduce the PyTorch split semantics.
    out = out_p[:T, :B, :n_output].reshape(T * B, n_output)
    hidden_out = hn_p[:, :B, :H]

    ng = n_gaussian
    mu1 = out[:, 0 * ng:1 * ng]
    mu2 = out[:, 1 * ng:2 * ng]
    log_sigma1 = out[:, 2 * ng:3 * ng]
    log_sigma2 = out[:, 3 * ng:4 * ng]
    rho = out[:, 4 * ng:5 * ng]                       # tanh already applied in-kernel
    pi_logits = out[:, 5 * ng:6 * ng]
    z0_logits = out[:, 6 * ng:6 * ng + 1]
    if input_size == 3:
        d0_logits = jnp.zeros((0,), jnp.float32)      # torch.tensor([]) equivalent
    else:
        d0_logits = out[:, 6 * ng + 1:6 * ng + 2]
    return (mu1, mu2, log_sigma1, log_sigma2, rho, pi_logits,
            z0_logits, d0_logits, hidden_out)


# -----------------------------------------------------------------------------
# Parameter init (deterministic, PyTorch-style uniform(-1/sqrt(H), 1/sqrt(H))).
# Weights stored pre-transposed: (D_in, 3H)/(H, 3H), gate column order [r|z|n].
# -----------------------------------------------------------------------------
def init_params(key, *, n_gaussian, rnn_size, rnn_layers, input_size):
    H = rnn_size
    n_output = (1 if input_size == 3 else 2) + n_gaussian * 6
    stdv = 1.0 / math.sqrt(H)
    params = {"w_ih_t": [], "w_hh_t": [], "b_ih": [], "b_hh": []}
    for layer in range(rnn_layers):
        d_in = input_size if layer == 0 else H
        key, k1, k2, k3, k4 = jax.random.split(key, 5)
        params["w_ih_t"].append(
            jax.random.uniform(k1, (d_in, 3 * H), jnp.float32, -stdv, stdv))
        params["w_hh_t"].append(
            jax.random.uniform(k2, (H, 3 * H), jnp.float32, -stdv, stdv))
        params["b_ih"].append(
            jax.random.uniform(k3, (3 * H,), jnp.float32, -stdv, stdv))
        params["b_hh"].append(
            jax.random.uniform(k4, (3 * H,), jnp.float32, -stdv, stdv))
    key, k5, k6 = jax.random.split(key, 3)
    params["lin_w_t"] = jax.random.uniform(k5, (H, n_output), jnp.float32, -stdv, stdv)
    params["lin_b"] = jax.random.uniform(k6, (n_output,), jnp.float32, -stdv, stdv)
    return params


# -----------------------------------------------------------------------------
# Pure-JAX reference for correctness checking.
# -----------------------------------------------------------------------------
def ref_forward(params, x, hidden, *, n_gaussian, input_size):
    T, B, _ = x.shape
    L = len(params["w_ih_t"])
    H = params["w_hh_t"][0].shape[0]
    layer_in = x
    h_finals = []
    for layer in range(L):
        wih_t = params["w_ih_t"][layer]
        whh_t = params["w_hh_t"][layer]
        bih = params["b_ih"][layer]
        bhh = params["b_hh"][layer]
        h = hidden[layer]
        outs = []
        for t in range(T):
            gi = layer_in[t] @ wih_t + bih
            gh = h @ whh_t + bhh
            r = jax.nn.sigmoid(gi[:, :H] + gh[:, :H])
            z = jax.nn.sigmoid(gi[:, H:2 * H] + gh[:, H:2 * H])
            n = jnp.tanh(gi[:, 2 * H:] + r * gh[:, 2 * H:])
            h = (1.0 - z) * n + z * h
            outs.append(h)
        layer_in = jnp.stack(outs, axis=0)
        h_finals.append(h)
    feats = layer_in.reshape(-1, H)
    y = feats @ params["lin_w_t"] + params["lin_b"]
    ng = n_gaussian
    y = y.at[:, 4 * ng:5 * ng].set(jnp.tanh(y[:, 4 * ng:5 * ng]))
    return y, jnp.stack(h_finals, axis=0)


if __name__ == "__main__":
    N_GAUSSIAN, RNN_SIZE, RNN_LAYERS, INPUT_SIZE = 20, 32, 2, 3

    key = jax.random.PRNGKey(0)
    key, pkey = jax.random.split(key)
    params = init_params(pkey, n_gaussian=N_GAUSSIAN, rnn_size=RNN_SIZE,
                         rnn_layers=RNN_LAYERS, input_size=INPUT_SIZE)

    def run_and_check(T, B, compute_dtype, time_chunk, rtol, atol, xkey):
        x = jax.random.normal(xkey, (T, B, INPUT_SIZE), jnp.float32)
        h0 = jnp.zeros((RNN_LAYERS, B, RNN_SIZE), jnp.float32)
        fwd = jax.jit(functools.partial(
            gaussian_writing_gru_forward, n_gaussian=N_GAUSSIAN,
            input_size=INPUT_SIZE, compute_dtype=compute_dtype,
            time_chunk=time_chunk))
        outs = jax.block_until_ready(fwd(params, x, h0))
        (mu1, mu2, log_sigma1, log_sigma2, rho, pi_logits,
         z0_logits, d0_logits, hidden_out) = outs

        N, ng = T * B, N_GAUSSIAN
        assert mu1.shape == (N, ng) and mu2.shape == (N, ng)
        assert log_sigma1.shape == (N, ng) and log_sigma2.shape == (N, ng)
        assert rho.shape == (N, ng) and pi_logits.shape == (N, ng)
        assert z0_logits.shape == (N, 1)
        assert d0_logits.shape == (0,)
        assert hidden_out.shape == (RNN_LAYERS, B, RNN_SIZE)

        y_ref, hidden_ref = ref_forward(params, x, h0, n_gaussian=ng,
                                        input_size=INPUT_SIZE)
        assert jnp.allclose(mu1, y_ref[:, 0:ng], rtol=rtol, atol=atol)
        assert jnp.allclose(mu2, y_ref[:, ng:2 * ng], rtol=rtol, atol=atol)
        assert jnp.allclose(log_sigma1, y_ref[:, 2 * ng:3 * ng], rtol=rtol, atol=atol)
        assert jnp.allclose(log_sigma2, y_ref[:, 3 * ng:4 * ng], rtol=rtol, atol=atol)
        assert jnp.allclose(rho, y_ref[:, 4 * ng:5 * ng], rtol=rtol, atol=atol)
        assert jnp.allclose(pi_logits, y_ref[:, 5 * ng:6 * ng], rtol=rtol, atol=atol)
        assert jnp.allclose(z0_logits, y_ref[:, 6 * ng:6 * ng + 1], rtol=rtol, atol=atol)
        assert jnp.allclose(hidden_out, hidden_ref, rtol=rtol, atol=atol)

    key, k1, k2, k3 = jax.random.split(key, 4)
    # float32 path, single time chunk (demo shape): strict vs pure-JAX reference.
    run_and_check(T=8, B=2, compute_dtype=jnp.float32, time_chunk=None,
                  rtol=1e-4, atol=1e-4, xkey=k1)
    # float32 path, multi-chunk grid with padded (masked) time tail: strict.
    run_and_check(T=8, B=2, compute_dtype=jnp.float32, time_chunk=3,
                  rtol=1e-4, atol=1e-4, xkey=k1)
    # float32 path, partially-unrolled chunk + non-multiple-of-8 batch: strict.
    run_and_check(T=24, B=3, compute_dtype=jnp.float32, time_chunk=None,
                  rtol=1e-4, atol=1e-4, xkey=k2)
    # Default bf16 MXU-operand path (f32 accumulation / gate math): loose check.
    run_and_check(T=8, B=2, compute_dtype=jnp.bfloat16, time_chunk=None,
                  rtol=1e-1, atol=1e-1, xkey=k3)

    print("KERNEL_OK")
</pallas_src>

<mosaic_0001>
module attributes {stable_mosaic.version = 11 : i64} {
  func.func @fused_gru_head_kernel(%arg0: i32, %arg1: i32, %arg2: memref<8x8x3xf32, #tpu.memory_space<vmem>>, %arg3: memref<3x96xf32, #tpu.memory_space<vmem>>, %arg4: memref<32x96xf32, #tpu.memory_space<vmem>>, %arg5: memref<1x96xf32, #tpu.memory_space<vmem>>, %arg6: memref<1x96xf32, #tpu.memory_space<vmem>>, %arg7: memref<32x96xf32, #tpu.memory_space<vmem>>, %arg8: memref<32x96xf32, #tpu.memory_space<vmem>>, %arg9: memref<1x96xf32, #tpu.memory_space<vmem>>, %arg10: memref<1x96xf32, #tpu.memory_space<vmem>>, %arg11: memref<2x8x32xf32, #tpu.memory_space<vmem>>, %arg12: memref<32x128xf32, #tpu.memory_space<vmem>>, %arg13: memref<1x128xf32, #tpu.memory_space<vmem>>, %arg14: memref<8x8x128xf32, #tpu.memory_space<vmem>>, %arg15: memref<2x8x32xf32, #tpu.memory_space<vmem>>, %arg16: memref<8x8x96xf32, #tpu.memory_space<vmem>>, %arg17: memref<8x8x32xf32, #tpu.memory_space<vmem>>) attributes {dimension_semantics = [#tpu.dimension_semantics<parallel>, #tpu.dimension_semantics<arbitrary>], iteration_bounds = array<i64: 1, 1>, scalar_prefetch = 0 : i64, scratch_operands = 2 : i64, tpu.core_type = #tpu.core_type<tc>, window_params = [{transform_indices = @transform_0, window_bounds = array<i64: 8, 8, 3>}, {pipeline_mode = #tpu.pipeline_mode<synchronous>, transform_indices = @transform_1, window_bounds = array<i64: 3, 96>}, {pipeline_mode = #tpu.pipeline_mode<synchronous>, transform_indices = @transform_2, window_bounds = array<i64: 32, 96>}, {pipeline_mode = #tpu.pipeline_mode<synchronous>, transform_indices = @transform_3, window_bounds = array<i64: 1, 96>}, {pipeline_mode = #tpu.pipeline_mode<synchronous>, transform_indices = @transform_4, window_bounds = array<i64: 1, 96>}, {pipeline_mode = #tpu.pipeline_mode<synchronous>, transform_indices = @transform_5, window_bounds = array<i64: 32, 96>}, {pipeline_mode = #tpu.pipeline_mode<synchronous>, transform_indices = @transform_6, window_bounds = array<i64: 32, 96>}, {pipeline_mode = #tpu.pipeline_mode<synchronous>, transform_indices = @transform_7, window_bounds = array<i64: 1, 96>}, {pipeline_mode = #tpu.pipeline_mode<synchronous>, transform_indices = @transform_8, window_bounds = array<i64: 1, 96>}, {transform_indices = @transform_9, window_bounds = array<i64: 2, 8, 32>}, {pipeline_mode = #tpu.pipeline_mode<synchronous>, transform_indices = @transform_10, window_bounds = array<i64: 32, 128>}, {pipeline_mode = #tpu.pipeline_mode<synchronous>, transform_indices = @transform_11, window_bounds = array<i64: 1, 128>}, {transform_indices = @transform_12, window_bounds = array<i64: 8, 8, 128>}, {transform_indices = @transform_13, window_bounds = array<i64: 2, 8, 32>}]} {
    %c0_i32 = arith.constant 0 : i32
    %0 = arith.cmpi eq, %arg1, %c0_i32 : i32
    %1 = arith.extui %0 : i1 to i32
    %c0_i32_0 = arith.constant 0 : i32
    %2 = arith.cmpi ne, %1, %c0_i32_0 : i32
    scf.if %2 {
      %c0_233 = arith.constant 0 : index
      %c0_234 = arith.constant 0 : index
      %c0_235 = arith.constant 0 : index
      %633 = vector.load %arg11[%c0_233, %c0_234, %c0_235] : memref<2x8x32xf32, #tpu.memory_space<vmem>>, vector<2x8x32xf32>
      %c0_236 = arith.constant 0 : index
      %c0_237 = arith.constant 0 : index
      %c0_238 = arith.constant 0 : index
      %634 = vector.load %arg15[%c0_236, %c0_237, %c0_238] : memref<2x8x32xf32, #tpu.memory_space<vmem>>, vector<2x8x32xf32>
      tpu.vector_store %arg15[%c0_236, %c0_237, %c0_238], %633 {strides = array<i32>} : memref<2x8x32xf32, #tpu.memory_space<vmem>>, vector<2x8x32xf32>,
    } else {
    }
    %c0 = arith.constant 0 : index
    %c0_1 = arith.constant 0 : index
    %c0_2 = arith.constant 0 : index
    %3 = vector.load %arg2[%c0, %c0_1, %c0_2] : memref<8x8x3xf32, #tpu.memory_space<vmem>>, vector<8x8x3xf32>
    %4 = vector.shape_cast %3 : vector<8x8x3xf32> to vector<64x3xf32>
    %c0_3 = arith.constant 0 : index
    %c0_4 = arith.constant 0 : index
    %5 = vector.load %arg3[%c0_3, %c0_4] : memref<3x96xf32, #tpu.memory_space<vmem>>, vector<3x96xf32>
    %cst = arith.constant dense<0.000000e+00> : vector<64x96xf32>
    %6 = tpu.matmul %4, %5, %cst {dimension_numbers = #tpu.dot_dimension_numbers<[1], [0], [0], [1], [0, 0, 1, 1], [], []>} : vector<64x3xf32>, vector<3x96xf32>, vector<64x96xf32> -> vector<64x96xf32>
    %c0_5 = arith.constant 0 : index
    %c0_6 = arith.constant 0 : index
    %7 = vector.load %arg5[%c0_5, %c0_6] : memref<1x96xf32, #tpu.memory_space<vmem>>, vector<1x96xf32>
    %8 = vector.broadcast %7 : vector<1x96xf32> to vector<64x96xf32>
    %9 = arith.addf %6, %8 : vector<64x96xf32>
    %10 = vector.shape_cast %9 : vector<64x96xf32> to vector<8x8x96xf32>
    %c0_7 = arith.constant 0 : index
    %c0_8 = arith.constant 0 : index
    %c0_9 = arith.constant 0 : index
    %11 = vector.load %arg16[%c0_7, %c0_8, %c0_9] : memref<8x8x96xf32, #tpu.memory_space<vmem>>, vector<8x8x96xf32>
    tpu.vector_store %arg16[%c0_7, %c0_8, %c0_9], %10 {strides = array<i32>} : memref<8x8x96xf32, #tpu.memory_space<vmem>>, vector<8x8x96xf32>,
    %c0_10 = arith.constant 0 : index
    %c0_11 = arith.constant 0 : index
    %c0_12 = arith.constant 0 : index
    %12 = vector.load %arg15[%c0_10, %c0_11, %c0_12] : memref<2x8x32xf32, #tpu.memory_space<vmem>>, vector<1x8x32xf32>
    %13 = vector.shape_cast %12 : vector<1x8x32xf32> to vector<8x32xf32>
    %c1 = arith.constant 1 : index
    %c0_13 = arith.constant 0 : index
    %c0_14 = arith.constant 0 : index
    %14 = vector.load %arg15[%c1, %c0_13, %c0_14] : memref<2x8x32xf32, #tpu.memory_space<vmem>>, vector<1x8x32xf32>
    %15 = vector.shape_cast %14 : vector<1x8x32xf32> to vector<8x32xf32>
    %c0_i32_15 = arith.constant 0 : i32
    %16 = arith.index_cast %c0_i32_15 : i32 to index
    %c0_16 = arith.constant 0 : index
    %c0_17 = arith.constant 0 : index
    %17 = vector.load %arg16[%16, %c0_16, %c0_17] : memref<8x8x96xf32, #tpu.memory_space<vmem>>, vector<1x8x96xf32>
    %18 = vector.shape_cast %17 : vector<1x8x96xf32> to vector<8x96xf32>
    %c0_18 = arith.constant 0 : index
    %c0_19 = arith.constant 0 : index
    %19 = vector.load %arg4[%c0_18, %c0_19] : memref<32x96xf32, #tpu.memory_space<vmem>>, vector<32x96xf32>
    %cst_20 = arith.constant dense<0.000000e+00> : vector<8x96xf32>
    %20 = tpu.matmul %13, %19, %cst_20 {dimension_numbers = #tpu.dot_dimension_numbers<[1], [0], [0], [1], [0, 0, 1, 1], [], []>} : vector<8x32xf32>, vector<32x96xf32>, vector<8x96xf32> -> vector<8x96xf32>
    %c0_21 = arith.constant 0 : index
    %c0_22 = arith.constant 0 : index
    %21 = vector.load %arg6[%c0_21, %c0_22] : memref<1x96xf32, #tpu.memory_space<vmem>>, vector<1x96xf32>
    %22 = vector.broadcast %21 : vector<1x96xf32> to vector<8x96xf32>
    %23 = arith.addf %20, %22 : vector<8x96xf32>
    %24 = vector.extract_strided_slice %18 {offsets = [0, 0], sizes = [8, 32], strides = [1, 1]} : vector<8x96xf32> to vector<8x32xf32>
    %25 = vector.extract_strided_slice %23 {offsets = [0, 0], sizes = [8, 32], strides = [1, 1]} : vector<8x96xf32> to vector<8x32xf32>
    %26 = arith.addf %24, %25 : vector<8x32xf32>
    %27 = arith.negf %26 : vector<8x32xf32>
    %28 = math.exp %27 : vector<8x32xf32>
    %cst_23 = arith.constant 1.000000e+00 : f32
    %29 = vector.broadcast %cst_23 : f32 to vector<8x32xf32>
    %30 = arith.addf %29, %28 : vector<8x32xf32>
    %31 = arith.divf %29, %30 : vector<8x32xf32>
    %32 = vector.extract_strided_slice %18 {offsets = [0, 32], sizes = [8, 32], strides = [1, 1]} : vector<8x96xf32> to vector<8x32xf32>
    %33 = vector.extract_strided_slice %23 {offsets = [0, 32], sizes = [8, 32], strides = [1, 1]} : vector<8x96xf32> to vector<8x32xf32>
    %34 = arith.addf %32, %33 : vector<8x32xf32>
    %35 = arith.negf %34 : vector<8x32xf32>
    %36 = math.exp %35 : vector<8x32xf32>
    %cst_24 = arith.constant 1.000000e+00 : f32
    %37 = vector.broadcast %cst_24 : f32 to vector<8x32xf32>
    %38 = arith.addf %37, %36 : vector<8x32xf32>
    %39 = arith.divf %37, %38 : vector<8x32xf32>
    %40 = vector.extract_strided_slice %18 {offsets = [0, 64], sizes = [8, 32], strides = [1, 1]} : vector<8x96xf32> to vector<8x32xf32>
    %41 = vector.extract_strided_slice %23 {offsets = [0, 64], sizes = [8, 32], strides = [1, 1]} : vector<8x96xf32> to vector<8x32xf32>
    %42 = arith.mulf %31, %41 : vector<8x32xf32>
    %43 = arith.addf %40, %42 : vector<8x32xf32>
    %44 = math.tanh %43 : vector<8x32xf32>
    %cst_25 = arith.constant 1.000000e+00 : f32
    %45 = vector.broadcast %cst_25 : f32 to vector<8x32xf32>
    %46 = arith.subf %45, %39 : vector<8x32xf32>
    %47 = arith.mulf %46, %44 : vector<8x32xf32>
    %48 = arith.mulf %39, %13 : vector<8x32xf32>
    %49 = arith.addf %47, %48 : vector<8x32xf32>
    %c0_26 = arith.constant 0 : index
    %c0_27 = arith.constant 0 : index
    %50 = vector.load %arg7[%c0_26, %c0_27] : memref<32x96xf32, #tpu.memory_space<vmem>>, vector<32x96xf32>
    %cst_28 = arith.constant dense<0.000000e+00> : vector<8x96xf32>
    %51 = tpu.matmul %49, %50, %cst_28 {dimension_numbers = #tpu.dot_dimension_numbers<[1], [0], [0], [1], [0, 0, 1, 1], [], []>} : vector<8x32xf32>, vector<32x96xf32>, vector<8x96xf32> -> vector<8x96xf32>
    %c0_29 = arith.constant 0 : index
    %c0_30 = arith.constant 0 : index
    %52 = vector.load %arg9[%c0_29, %c0_30] : memref<1x96xf32, #tpu.memory_space<vmem>>, vector<1x96xf32>
    %53 = vector.broadcast %52 : vector<1x96xf32> to vector<8x96xf32>
    %54 = arith.addf %51, %53 : vector<8x96xf32>
    %c0_31 = arith.constant 0 : index
    %c0_32 = arith.constant 0 : index
    %55 = vector.load %arg8[%c0_31, %c0_32] : memref<32x96xf32, #tpu.memory_space<vmem>>, vector<32x96xf32>
    %cst_33 = arith.constant dense<0.000000e+00> : vector<8x96xf32>
    %56 = tpu.matmul %15, %55, %cst_33 {dimension_numbers = #tpu.dot_dimension_numbers<[1], [0], [0], [1], [0, 0, 1, 1], [], []>} : vector<8x32xf32>, vector<32x96xf32>, vector<8x96xf32> -> vector<8x96xf32>
    %c0_34 = arith.constant 0 : index
    %c0_35 = arith.constant 0 : index
    %57 = vector.load %arg10[%c0_34, %c0_35] : memref<1x96xf32, #tpu.memory_space<vmem>>, vector<1x96xf32>
    %58 = vector.broadcast %57 : vector<1x96xf32> to vector<8x96xf32>
    %59 = arith.addf %56, %58 : vector<8x96xf32>
    %60 = vector.extract_strided_slice %54 {offsets = [0, 0], sizes = [8, 32], strides = [1, 1]} : vector<8x96xf32> to vector<8x32xf32>
    %61 = vector.extract_strided_slice %59 {offsets = [0, 0], sizes = [8, 32], strides = [1, 1]} : vector<8x96xf32> to vector<8x32xf32>
    %62 = arith.addf %60, %61 : vector<8x32xf32>
    %63 = arith.negf %62 : vector<8x32xf32>
    %64 = math.exp %63 : vector<8x32xf32>
    %cst_36 = arith.constant 1.000000e+00 : f32
    %65 = vector.broadcast %cst_36 : f32 to vector<8x32xf32>
    %66 = arith.addf %65, %64 : vector<8x32xf32>
    %67 = arith.divf %65, %66 : vector<8x32xf32>
    %68 = vector.extract_strided_slice %54 {offsets = [0, 32], sizes = [8, 32], strides = [1, 1]} : vector<8x96xf32> to vector<8x32xf32>
    %69 = vector.extract_strided_slice %59 {offsets = [0, 32], sizes = [8, 32], strides = [1, 1]} : vector<8x96xf32> to vector<8x32xf32>
    %70 = arith.addf %68, %69 : vector<8x32xf32>
    %71 = arith.negf %70 : vector<8x32xf32>
    %72 = math.exp %71 : vector<8x32xf32>
    %cst_37 = arith.constant 1.000000e+00 : f32
    %73 = vector.broadcast %cst_37 : f32 to vector<8x32xf32>
    %74 = arith.addf %73, %72 : vector<8x32xf32>
    %75 = arith.divf %73, %74 : vector<8x32xf32>
    %76 = vector.extract_strided_slice %54 {offsets = [0, 64], sizes = [8, 32], strides = [1, 1]} : vector<8x96xf32> to vector<8x32xf32>
    %77 = vector.extract_strided_slice %59 {offsets = [0, 64], sizes = [8, 32], strides = [1, 1]} : vector<8x96xf32> to vector<8x32xf32>
    %78 = arith.mulf %67, %77 : vector<8x32xf32>
    %79 = arith.addf %76, %78 : vector<8x32xf32>
    %80 = math.tanh %79 : vector<8x32xf32>
    %cst_38 = arith.constant 1.000000e+00 : f32
    %81 = vector.broadcast %cst_38 : f32 to vector<8x32xf32>
    %82 = arith.subf %81, %75 : vector<8x32xf32>
    %83 = arith.mulf %82, %80 : vector<8x32xf32>
    %84 = arith.mulf %75, %15 : vector<8x32xf32>
    %85 = arith.addf %83, %84 : vector<8x32xf32>
    %86 = arith.index_cast %c0_i32_15 : i32 to index
    %c0_39 = arith.constant 0 : index
    %c0_40 = arith.constant 0 : index
    %87 = vector.load %arg17[%86, %c0_39, %c0_40] : memref<8x8x32xf32, #tpu.memory_space<vmem>>, vector<1x8x32xf32>
    %88 = vector.shape_cast %87 : vector<1x8x32xf32> to vector<8x32xf32>
    %89 = vector.shape_cast %85 : vector<8x32xf32> to vector<1x8x32xf32>
    tpu.vector_store %arg17[%86, %c0_39, %c0_40], %89 {strides = array<i32>} : memref<8x8x32xf32, #tpu.memory_space<vmem>>, vector<1x8x32xf32>,
    %c1_i32 = arith.constant 1 : i32
    %90 = arith.index_cast %c1_i32 : i32 to index
    %c0_41 = arith.constant 0 : index
    %c0_42 = arith.constant 0 : index
    %91 = vector.load %arg16[%90, %c0_41, %c0_42] : memref<8x8x96xf32, #tpu.memory_space<vmem>>, vector<1x8x96xf32>
    %92 = vector.shape_cast %91 : vector<1x8x96xf32> to vector<8x96xf32>
    %c0_43 = arith.constant 0 : index
    %c0_44 = arith.constant 0 : index
    %93 = vector.load %arg4[%c0_43, %c0_44] : memref<32x96xf32, #tpu.memory_space<vmem>>, vector<32x96xf32>
    %cst_45 = arith.constant dense<0.000000e+00> : vector<8x96xf32>
    %94 = tpu.matmul %49, %93, %cst_45 {dimension_numbers = #tpu.dot_dimension_numbers<[1], [0], [0], [1], [0, 0, 1, 1], [], []>} : vector<8x32xf32>, vector<32x96xf32>, vector<8x96xf32> -> vector<8x96xf32>
    %c0_46 = arith.constant 0 : index
    %c0_47 = arith.constant 0 : index
    %95 = vector.load %arg6[%c0_46, %c0_47] : memref<1x96xf32, #tpu.memory_space<vmem>>, vector<1x96xf32>
    %96 = vector.broadcast %95 : vector<1x96xf32> to vector<8x96xf32>
    %97 = arith.addf %94, %96 : vector<8x96xf32>
    %98 = vector.extract_strided_slice %92 {offsets = [0, 0], sizes = [8, 32], strides = [1, 1]} : vector<8x96xf32> to vector<8x32xf32>
    %99 = vector.extract_strided_slice %97 {offsets = [0, 0], sizes = [8, 32], strides = [1, 1]} : vector<8x96xf32> to vector<8x32xf32>
    %100 = arith.addf %98, %99 : vector<8x32xf32>
    %101 = arith.negf %100 : vector<8x32xf32>
    %102 = math.exp %101 : vector<8x32xf32>
    %cst_48 = arith.constant 1.000000e+00 : f32
    %103 = vector.broadcast %cst_48 : f32 to vector<8x32xf32>
    %104 = arith.addf %103, %102 : vector<8x32xf32>
    %105 = arith.divf %103, %104 : vector<8x32xf32>
    %106 = vector.extract_strided_slice %92 {offsets = [0, 32], sizes = [8, 32], strides = [1, 1]} : vector<8x96xf32> to vector<8x32xf32>
    %107 = vector.extract_strided_slice %97 {offsets = [0, 32], sizes = [8, 32], strides = [1, 1]} : vector<8x96xf32> to vector<8x32xf32>
    %108 = arith.addf %106, %107 : vector<8x32xf32>
    %109 = arith.negf %108 : vector<8x32xf32>
    %110 = math.exp %109 : vector<8x32xf32>
    %cst_49 = arith.constant 1.000000e+00 : f32
    %111 = vector.broadcast %cst_49 : f32 to vector<8x32xf32>
    %112 = arith.addf %111, %110 : vector<8x32xf32>
    %113 = arith.divf %111, %112 : vector<8x32xf32>
    %114 = vector.extract_strided_slice %92 {offsets = [0, 64], sizes = [8, 32], strides = [1, 1]} : vector<8x96xf32> to vector<8x32xf32>
    %115 = vector.extract_strided_slice %97 {offsets = [0, 64], sizes = [8, 32], strides = [1, 1]} : vector<8x96xf32> to vector<8x32xf32>
    %116 = arith.mulf %105, %115 : vector<8x32xf32>
    %117 = arith.addf %114, %116 : vector<8x32xf32>
    %118 = math.tanh %117 : vector<8x32xf32>
    %cst_50 = arith.constant 1.000000e+00 : f32
    %119 = vector.broadcast %cst_50 : f32 to vector<8x32xf32>
    %120 = arith.subf %119, %113 : vector<8x32xf32>
    %121 = arith.mulf %120, %118 : vector<8x32xf32>
    %122 = arith.mulf %113, %49 : vector<8x32xf32>
    %123 = arith.addf %121, %122 : vector<8x32xf32>
    %c0_51 = arith.constant 0 : index
    %c0_52 = arith.constant 0 : index
    %124 = vector.load %arg7[%c0_51, %c0_52] : memref<32x96xf32, #tpu.memory_space<vmem>>, vector<32x96xf32>
    %cst_53 = arith.constant dense<0.000000e+00> : vector<8x96xf32>
    %125 = tpu.matmul %123, %124, %cst_53 {dimension_numbers = #tpu.dot_dimension_numbers<[1], [0], [0], [1], [0, 0, 1, 1], [], []>} : vector<8x32xf32>, vector<32x96xf32>, vector<8x96xf32> -> vector<8x96xf32>
    %c0_54 = arith.constant 0 : index
    %c0_55 = arith.constant 0 : index
    %126 = vector.load %arg9[%c0_54, %c0_55] : memref<1x96xf32, #tpu.memory_space<vmem>>, vector<1x96xf32>
    %127 = vector.broadcast %126 : vector<1x96xf32> to vector<8x96xf32>
    %128 = arith.addf %125, %127 : vector<8x96xf32>
    %c0_56 = arith.constant 0 : index
    %c0_57 = arith.constant 0 : index
    %129 = vector.load %arg8[%c0_56, %c0_57] : memref<32x96xf32, #tpu.memory_space<vmem>>, vector<32x96xf32>
    %cst_58 = arith.constant dense<0.000000e+00> : vector<8x96xf32>
    %130 = tpu.matmul %85, %129, %cst_58 {dimension_numbers = #tpu.dot_dimension_numbers<[1], [0], [0], [1], [0, 0, 1, 1], [], []>} : vector<8x32xf32>, vector<32x96xf32>, vector<8x96xf32> -> vector<8x96xf32>
    %c0_59 = arith.constant 0 : index
    %c0_60 = arith.constant 0 : index
    %131 = vector.load %arg10[%c0_59, %c0_60] : memref<1x96xf32, #tpu.memory_space<vmem>>, vector<1x96xf32>
    %132 = vector.broadcast %131 : vector<1x96xf32> to vector<8x96xf32>
    %133 = arith.addf %130, %132 : vector<8x96xf32>
    %134 = vector.extract_strided_slice %128 {offsets = [0, 0], sizes = [8, 32], strides = [1, 1]} : vector<8x96xf32> to vector<8x32xf32>
    %135 = vector.extract_strided_slice %133 {offsets = [0, 0], sizes = [8, 32], strides = [1, 1]} : vector<8x96xf32> to vector<8x32xf32>
    %136 = arith.addf %134, %135 : vector<8x32xf32>
    %137 = arith.negf %136 : vector<8x32xf32>
    %138 = math.exp %137 : vector<8x32xf32>
    %cst_61 = arith.constant 1.000000e+00 : f32
    %139 = vector.broadcast %cst_61 : f32 to vector<8x32xf32>
    %140 = arith.addf %139, %138 : vector<8x32xf32>
    %141 = arith.divf %139, %140 : vector<8x32xf32>
    %142 = vector.extract_strided_slice %128 {offsets = [0, 32], sizes = [8, 32], strides = [1, 1]} : vector<8x96xf32> to vector<8x32xf32>
    %143 = vector.extract_strided_slice %133 {offsets = [0, 32], sizes = [8, 32], strides = [1, 1]} : vector<8x96xf32> to vector<8x32xf32>
    %144 = arith.addf %142, %143 : vector<8x32xf32>
    %145 = arith.negf %144 : vector<8x32xf32>
    %146 = math.exp %145 : vector<8x32xf32>
    %cst_62 = arith.constant 1.000000e+00 : f32
    %147 = vector.broadcast %cst_62 : f32 to vector<8x32xf32>
    %148 = arith.addf %147, %146 : vector<8x32xf32>
    %149 = arith.divf %147, %148 : vector<8x32xf32>
    %150 = vector.extract_strided_slice %128 {offsets = [0, 64], sizes = [8, 32], strides = [1, 1]} : vector<8x96xf32> to vector<8x32xf32>
    %151 = vector.extract_strided_slice %133 {offsets = [0, 64], sizes = [8, 32], strides = [1, 1]} : vector<8x96xf32> to vector<8x32xf32>
    %152 = arith.mulf %141, %151 : vector<8x32xf32>
    %153 = arith.addf %150, %152 : vector<8x32xf32>
    %154 = math.tanh %153 : vector<8x32xf32>
    %cst_63 = arith.constant 1.000000e+00 : f32
    %155 = vector.broadcast %cst_63 : f32 to vector<8x32xf32>
    %156 = arith.subf %155, %149 : vector<8x32xf32>
    %157 = arith.mulf %156, %154 : vector<8x32xf32>
    %158 = arith.mulf %149, %85 : vector<8x32xf32>
    %159 = arith.addf %157, %158 : vector<8x32xf32>
    %160 = arith.index_cast %c1_i32 : i32 to index
    %c0_64 = arith.constant 0 : index
    %c0_65 = arith.constant 0 : index
    %161 = vector.load %arg17[%160, %c0_64, %c0_65] : memref<8x8x32xf32, #tpu.memory_space<vmem>>, vector<1x8x32xf32>
    %162 = vector.shape_cast %161 : vector<1x8x32xf32> to vector<8x32xf32>
    %163 = vector.shape_cast %159 : vector<8x32xf32> to vector<1x8x32xf32>
    tpu.vector_store %arg17[%160, %c0_64, %c0_65], %163 {strides = array<i32>} : memref<8x8x32xf32, #tpu.memory_space<vmem>>, vector<1x8x32xf32>,
    %c2_i32 = arith.constant 2 : i32
    %164 = arith.index_cast %c2_i32 : i32 to index
    %c0_66 = arith.constant 0 : index
    %c0_67 = arith.constant 0 : index
    %165 = vector.load %arg16[%164, %c0_66, %c0_67] : memref<8x8x96xf32, #tpu.memory_space<vmem>>, vector<1x8x96xf32>
    %166 = vector.shape_cast %165 : vector<1x8x96xf32> to vector<8x96xf32>
    %c0_68 = arith.constant 0 : index
    %c0_69 = arith.constant 0 : index
    %167 = vector.load %arg4[%c0_68, %c0_69] : memref<32x96xf32, #tpu.memory_space<vmem>>, vector<32x96xf32>
    %cst_70 = arith.constant dense<0.000000e+00> : vector<8x96xf32>
    %168 = tpu.matmul %123, %167, %cst_70 {dimension_numbers = #tpu.dot_dimension_numbers<[1], [0], [0], [1], [0, 0, 1, 1], [], []>} : vector<8x32xf32>, vector<32x96xf32>, vector<8x96xf32> -> vector<8x96xf32>
    %c0_71 = arith.constant 0 : index
    %c0_72 = arith.constant 0 : index
    %169 = vector.load %arg6[%c0_71, %c0_72] : memref<1x96xf32, #tpu.memory_space<vmem>>, vector<1x96xf32>
    %170 = vector.broadcast %169 : vector<1x96xf32> to vector<8x96xf32>
    %171 = arith.addf %168, %170 : vector<8x96xf32>
    %172 = vector.extract_strided_slice %166 {offsets = [0, 0], sizes = [8, 32], strides = [1, 1]} : vector<8x96xf32> to vector<8x32xf32>
    %173 = vector.extract_strided_slice %171 {offsets = [0, 0], sizes = [8, 32], strides = [1, 1]} : vector<8x96xf32> to vector<8x32xf32>
    %174 = arith.addf %172, %173 : vector<8x32xf32>
    %175 = arith.negf %174 : vector<8x32xf32>
    %176 = math.exp %175 : vector<8x32xf32>
    %cst_73 = arith.constant 1.000000e+00 : f32
    %177 = vector.broadcast %cst_73 : f32 to vector<8x32xf32>
    %178 = arith.addf %177, %176 : vector<8x32xf32>
    %179 = arith.divf %177, %178 : vector<8x32xf32>
    %180 = vector.extract_strided_slice %166 {offsets = [0, 32], sizes = [8, 32], strides = [1, 1]} : vector<8x96xf32> to vector<8x32xf32>
    %181 = vector.extract_strided_slice %171 {offsets = [0, 32], sizes = [8, 32], strides = [1, 1]} : vector<8x96xf32> to vector<8x32xf32>
    %182 = arith.addf %180, %181 : vector<8x32xf32>
    %183 = arith.negf %182 : vector<8x32xf32>
    %184 = math.exp %183 : vector<8x32xf32>
    %cst_74 = arith.constant 1.000000e+00 : f32
    %185 = vector.broadcast %cst_74 : f32 to vector<8x32xf32>
    %186 = arith.addf %185, %184 : vector<8x32xf32>
    %187 = arith.divf %185, %186 : vector<8x32xf32>
    %188 = vector.extract_strided_slice %166 {offsets = [0, 64], sizes = [8, 32], strides = [1, 1]} : vector<8x96xf32> to vector<8x32xf32>
    %189 = vector.extract_strided_slice %171 {offsets = [0, 64], sizes = [8, 32], strides = [1, 1]} : vector<8x96xf32> to vector<8x32xf32>
    %190 = arith.mulf %179, %189 : vector<8x32xf32>
    %191 = arith.addf %188, %190 : vector<8x32xf32>
    %192 = math.tanh %191 : vector<8x32xf32>
    %cst_75 = arith.constant 1.000000e+00 : f32
    %193 = vector.broadcast %cst_75 : f32 to vector<8x32xf32>
    %194 = arith.subf %193, %187 : vector<8x32xf32>
    %195 = arith.mulf %194, %192 : vector<8x32xf32>
    %196 = arith.mulf %187, %123 : vector<8x32xf32>
    %197 = arith.addf %195, %196 : vector<8x32xf32>
    %c0_76 = arith.constant 0 : index
    %c0_77 = arith.constant 0 : index
    %198 = vector.load %arg7[%c0_76, %c0_77] : memref<32x96xf32, #tpu.memory_space<vmem>>, vector<32x96xf32>
    %cst_78 = arith.constant dense<0.000000e+00> : vector<8x96xf32>
    %199 = tpu.matmul %197, %198, %cst_78 {dimension_numbers = #tpu.dot_dimension_numbers<[1], [0], [0], [1], [0, 0, 1, 1], [], []>} : vector<8x32xf32>, vector<32x96xf32>, vector<8x96xf32> -> vector<8x96xf32>
    %c0_79 = arith.constant 0 : index
    %c0_80 = arith.constant 0 : index
    %200 = vector.load %arg9[%c0_79, %c0_80] : memref<1x96xf32, #tpu.memory_space<vmem>>, vector<1x96xf32>
    %201 = vector.broadcast %200 : vector<1x96xf32> to vector<8x96xf32>
    %202 = arith.addf %199, %201 : vector<8x96xf32>
    %c0_81 = arith.constant 0 : index
    %c0_82 = arith.constant 0 : index
    %203 = vector.load %arg8[%c0_81, %c0_82] : memref<32x96xf32, #tpu.memory_space<vmem>>, vector<32x96xf32>
    %cst_83 = arith.constant dense<0.000000e+00> : vector<8x96xf32>
    %204 = tpu.matmul %159, %203, %cst_83 {dimension_numbers = #tpu.dot_dimension_numbers<[1], [0], [0], [1], [0, 0, 1, 1], [], []>} : vector<8x32xf32>, vector<32x96xf32>, vector<8x96xf32> -> vector<8x96xf32>
    %c0_84 = arith.constant 0 : index
    %c0_85 = arith.constant 0 : index
    %205 = vector.load %arg10[%c0_84, %c0_85] : memref<1x96xf32, #tpu.memory_space<vmem>>, vector<1x96xf32>
    %206 = vector.broadcast %205 : vector<1x96xf32> to vector<8x96xf32>
    %207 = arith.addf %204, %206 : vector<8x96xf32>
    %208 = vector.extract_strided_slice %202 {offsets = [0, 0], sizes = [8, 32], strides = [1, 1]} : vector<8x96xf32> to vector<8x32xf32>
    %209 = vector.extract_strided_slice %207 {offsets = [0, 0], sizes = [8, 32], strides = [1, 1]} : vector<8x96xf32> to vector<8x32xf32>
    %210 = arith.addf %208, %209 : vector<8x32xf32>
    %211 = arith.negf %210 : vector<8x32xf32>
    %212 = math.exp %211 : vector<8x32xf32>
    %cst_86 = arith.constant 1.000000e+00 : f32
    %213 = vector.broadcast %cst_86 : f32 to vector<8x32xf32>
    %214 = arith.addf %213, %212 : vector<8x32xf32>
    %215 = arith.divf %213, %214 : vector<8x32xf32>
    %216 = vector.extract_strided_slice %202 {offsets = [0, 32], sizes = [8, 32], strides = [1, 1]} : vector<8x96xf32> to vector<8x32xf32>
    %217 = vector.extract_strided_slice %207 {offsets = [0, 32], sizes = [8, 32], strides = [1, 1]} : vector<8x96xf32> to vector<8x32xf32>
    %218 = arith.addf %216, %217 : vector<8x32xf32>
    %219 = arith.negf %218 : vector<8x32xf32>
    %220 = math.exp %219 : vector<8x32xf32>
    %cst_87 = arith.constant 1.000000e+00 : f32
    %221 = vector.broadcast %cst_87 : f32 to vector<8x32xf32>
    %222 = arith.addf %221, %220 : vector<8x32xf32>
    %223 = arith.divf %221, %222 : vector<8x32xf32>
    %224 = vector.extract_strided_slice %202 {offsets = [0, 64], sizes = [8, 32], strides = [1, 1]} : vector<8x96xf32> to vector<8x32xf32>
    %225 = vector.extract_strided_slice %207 {offsets = [0, 64], sizes = [8, 32], strides = [1, 1]} : vector<8x96xf32> to vector<8x32xf32>
    %226 = arith.mulf %215, %225 : vector<8x32xf32>
    %227 = arith.addf %224, %226 : vector<8x32xf32>
    %228 = math.tanh %227 : vector<8x32xf32>
    %cst_88 = arith.constant 1.000000e+00 : f32
    %229 = vector.broadcast %cst_88 : f32 to vector<8x32xf32>
    %230 = arith.subf %229, %223 : vector<8x32xf32>
    %231 = arith.mulf %230, %228 : vector<8x32xf32>
    %232 = arith.mulf %223, %159 : vector<8x32xf32>
    %233 = arith.addf %231, %232 : vector<8x32xf32>
    %234 = arith.index_cast %c2_i32 : i32 to index
    %c0_89 = arith.constant 0 : index
    %c0_90 = arith.constant 0 : index
    %235 = vector.load %arg17[%234, %c0_89, %c0_90] : memref<8x8x32xf32, #tpu.memory_space<vmem>>, vector<1x8x32xf32>
    %236 = vector.shape_cast %235 : vector<1x8x32xf32> to vector<8x32xf32>
    %237 = vector.shape_cast %233 : vector<8x32xf32> to vector<1x8x32xf32>
    tpu.vector_store %arg17[%234, %c0_89, %c0_90], %237 {strides = array<i32>} : memref<8x8x32xf32, #tpu.memory_space<vmem>>, vector<1x8x32xf32>,
    %c3_i32 = arith.constant 3 : i32
    %238 = arith.index_cast %c3_i32 : i32 to index
    %c0_91 = arith.constant 0 : index
    %c0_92 = arith.constant 0 : index
    %239 = vector.load %arg16[%238, %c0_91, %c0_92] : memref<8x8x96xf32, #tpu.memory_space<vmem>>, vector<1x8x96xf32>
    %240 = vector.shape_cast %239 : vector<1x8x96xf32> to vector<8x96xf32>
    %c0_93 = arith.constant 0 : index
    %c0_94 = arith.constant 0 : index
    %241 = vector.load %arg4[%c0_93, %c0_94] : memref<32x96xf32, #tpu.memory_space<vmem>>, vector<32x96xf32>
    %cst_95 = arith.constant dense<0.000000e+00> : vector<8x96xf32>
    %242 = tpu.matmul %197, %241, %cst_95 {dimension_numbers = #tpu.dot_dimension_numbers<[1], [0], [0], [1], [0, 0, 1, 1], [], []>} : vector<8x32xf32>, vector<32x96xf32>, vector<8x96xf32> -> vector<8x96xf32>
    %c0_96 = arith.constant 0 : index
    %c0_97 = arith.constant 0 : index
    %243 = vector.load %arg6[%c0_96, %c0_97] : memref<1x96xf32, #tpu.memory_space<vmem>>, vector<1x96xf32>
    %244 = vector.broadcast %243 : vector<1x96xf32> to vector<8x96xf32>
    %245 = arith.addf %242, %244 : vector<8x96xf32>
    %246 = vector.extract_strided_slice %240 {offsets = [0, 0], sizes = [8, 32], strides = [1, 1]} : vector<8x96xf32> to vector<8x32xf32>
    %247 = vector.extract_strided_slice %245 {offsets = [0, 0], sizes = [8, 32], strides = [1, 1]} : vector<8x96xf32> to vector<8x32xf32>
    %248 = arith.addf %246, %247 : vector<8x32xf32>
    %249 = arith.negf %248 : vector<8x32xf32>
    %250 = math.exp %249 : vector<8x32xf32>
    %cst_98 = arith.constant 1.000000e+00 : f32
    %251 = vector.broadcast %cst_98 : f32 to vector<8x32xf32>
    %252 = arith.addf %251, %250 : vector<8x32xf32>
    %253 = arith.divf %251, %252 : vector<8x32xf32>
    %254 = vector.extract_strided_slice %240 {offsets = [0, 32], sizes = [8, 32], strides = [1, 1]} : vector<8x96xf32> to vector<8x32xf32>
    %255 = vector.extract_strided_slice %245 {offsets = [0, 32], sizes = [8, 32], strides = [1, 1]} : vector<8x96xf32> to vector<8x32xf32>
    %256 = arith.addf %254, %255 : vector<8x32xf32>
    %257 = arith.negf %256 : vector<8x32xf32>
    %258 = math.exp %257 : vector<8x32xf32>
    %cst_99 = arith.constant 1.000000e+00 : f32
    %259 = vector.broadcast %cst_99 : f32 to vector<8x32xf32>
    %260 = arith.addf %259, %258 : vector<8x32xf32>
    %261 = arith.divf %259, %260 : vector<8x32xf32>
    %262 = vector.extract_strided_slice %240 {offsets = [0, 64], sizes = [8, 32], strides = [1, 1]} : vector<8x96xf32> to vector<8x32xf32>
    %263 = vector.extract_strided_slice %245 {offsets = [0, 64], sizes = [8, 32], strides = [1, 1]} : vector<8x96xf32> to vector<8x32xf32>
    %264 = arith.mulf %253, %263 : vector<8x32xf32>
    %265 = arith.addf %262, %264 : vector<8x32xf32>
    %266 = math.tanh %265 : vector<8x32xf32>
    %cst_100 = arith.constant 1.000000e+00 : f32
    %267 = vector.broadcast %cst_100 : f32 to vector<8x32xf32>
    %268 = arith.subf %267, %261 : vector<8x32xf32>
    %269 = arith.mulf %268, %266 : vector<8x32xf32>
    %270 = arith.mulf %261, %197 : vector<8x32xf32>
    %271 = arith.addf %269, %270 : vector<8x32xf32>
    %c0_101 = arith.constant 0 : index
    %c0_102 = arith.constant 0 : index
    %272 = vector.load %arg7[%c0_101, %c0_102] : memref<32x96xf32, #tpu.memory_space<vmem>>, vector<32x96xf32>
    %cst_103 = arith.constant dense<0.000000e+00> : vector<8x96xf32>
    %273 = tpu.matmul %271, %272, %cst_103 {dimension_numbers = #tpu.dot_dimension_numbers<[1], [0], [0], [1], [0, 0, 1, 1], [], []>} : vector<8x32xf32>, vector<32x96xf32>, vector<8x96xf32> -> vector<8x96xf32>
    %c0_104 = arith.constant 0 : index
    %c0_105 = arith.constant 0 : index
    %274 = vector.load %arg9[%c0_104, %c0_105] : memref<1x96xf32, #tpu.memory_space<vmem>>, vector<1x96xf32>
    %275 = vector.broadcast %274 : vector<1x96xf32> to vector<8x96xf32>
    %276 = arith.addf %273, %275 : vector<8x96xf32>
    %c0_106 = arith.constant 0 : index
    %c0_107 = arith.constant 0 : index
    %277 = vector.load %arg8[%c0_106, %c0_107] : memref<32x96xf32, #tpu.memory_space<vmem>>, vector<32x96xf32>
    %cst_108 = arith.constant dense<0.000000e+00> : vector<8x96xf32>
    %278 = tpu.matmul %233, %277, %cst_108 {dimension_numbers = #tpu.dot_dimension_numbers<[1], [0], [0], [1], [0, 0, 1, 1], [], []>} : vector<8x32xf32>, vector<32x96xf32>, vector<8x96xf32> -> vector<8x96xf32>
    %c0_109 = arith.constant 0 : index
    %c0_110 = arith.constant 0 : index
    %279 = vector.load %arg10[%c0_109, %c0_110] : memref<1x96xf32, #tpu.memory_space<vmem>>, vector<1x96xf32>
    %280 = vector.broadcast %279 : vector<1x96xf32> to vector<8x96xf32>
    %281 = arith.addf %278, %280 : vector<8x96xf32>
    %282 = vector.extract_strided_slice %276 {offsets = [0, 0], sizes = [8, 32], strides = [1, 1]} : vector<8x96xf32> to vector<8x32xf32>
    %283 = vector.extract_strided_slice %281 {offsets = [0, 0], sizes = [8, 32], strides = [1, 1]} : vector<8x96xf32> to vector<8x32xf32>
    %284 = arith.addf %282, %283 : vector<8x32xf32>
    %285 = arith.negf %284 : vector<8x32xf32>
    %286 = math.exp %285 : vector<8x32xf32>
    %cst_111 = arith.constant 1.000000e+00 : f32
    %287 = vector.broadcast %cst_111 : f32 to vector<8x32xf32>
    %288 = arith.addf %287, %286 : vector<8x32xf32>
    %289 = arith.divf %287, %288 : vector<8x32xf32>
    %290 = vector.extract_strided_slice %276 {offsets = [0, 32], sizes = [8, 32], strides = [1, 1]} : vector<8x96xf32> to vector<8x32xf32>
    %291 = vector.extract_strided_slice %281 {offsets = [0, 32], sizes = [8, 32], strides = [1, 1]} : vector<8x96xf32> to vector<8x32xf32>
    %292 = arith.addf %290, %291 : vector<8x32xf32>
    %293 = arith.negf %292 : vector<8x32xf32>
    %294 = math.exp %293 : vector<8x32xf32>
    %cst_112 = arith.constant 1.000000e+00 : f32
    %295 = vector.broadcast %cst_112 : f32 to vector<8x32xf32>
    %296 = arith.addf %295, %294 : vector<8x32xf32>
    %297 = arith.divf %295, %296 : vector<8x32xf32>
    %298 = vector.extract_strided_slice %276 {offsets = [0, 64], sizes = [8, 32], strides = [1, 1]} : vector<8x96xf32> to vector<8x32xf32>
    %299 = vector.extract_strided_slice %281 {offsets = [0, 64], sizes = [8, 32], strides = [1, 1]} : vector<8x96xf32> to vector<8x32xf32>
    %300 = arith.mulf %289, %299 : vector<8x32xf32>
    %301 = arith.addf %298, %300 : vector<8x32xf32>
    %302 = math.tanh %301 : vector<8x32xf32>
    %cst_113 = arith.constant 1.000000e+00 : f32
    %303 = vector.broadcast %cst_113 : f32 to vector<8x32xf32>
    %304 = arith.subf %303, %297 : vector<8x32xf32>
    %305 = arith.mulf %304, %302 : vector<8x32xf32>
    %306 = arith.mulf %297, %233 : vector<8x32xf32>
    %307 = arith.addf %305, %306 : vector<8x32xf32>
    %308 = arith.index_cast %c3_i32 : i32 to index
    %c0_114 = arith.constant 0 : index
    %c0_115 = arith.constant 0 : index
    %309 = vector.load %arg17[%308, %c0_114, %c0_115] : memref<8x8x32xf32, #tpu.memory_space<vmem>>, vector<1x8x32xf32>
    %310 = vector.shape_cast %309 : vector<1x8x32xf32> to vector<8x32xf32>
    %311 = vector.shape_cast %307 : vector<8x32xf32> to vector<1x8x32xf32>
    tpu.vector_store %arg17[%308, %c0_114, %c0_115], %311 {strides = array<i32>} : memref<8x8x32xf32, #tpu.memory_space<vmem>>, vector<1x8x32xf32>,
    %c4_i32 = arith.constant 4 : i32
    %312 = arith.index_cast %c4_i32 : i32 to index
    %c0_116 = arith.constant 0 : index
    %c0_117 = arith.constant 0 : index
    %313 = vector.load %arg16[%312, %c0_116, %c0_117] : memref<8x8x96xf32, #tpu.memory_space<vmem>>, vector<1x8x96xf32>
    %314 = vector.shape_cast %313 : vector<1x8x96xf32> to vector<8x96xf32>
    %c0_118 = arith.constant 0 : index
    %c0_119 = arith.constant 0 : index
    %315 = vector.load %arg4[%c0_118, %c0_119] : memref<32x96xf32, #tpu.memory_space<vmem>>, vector<32x96xf32>
    %cst_120 = arith.constant dense<0.000000e+00> : vector<8x96xf32>
    %316 = tpu.matmul %271, %315, %cst_120 {dimension_numbers = #tpu.dot_dimension_numbers<[1], [0], [0], [1], [0, 0, 1, 1], [], []>} : vector<8x32xf32>, vector<32x96xf32>, vector<8x96xf32> -> vector<8x96xf32>
    %c0_121 = arith.constant 0 : index
    %c0_122 = arith.constant 0 : index
    %317 = vector.load %arg6[%c0_121, %c0_122] : memref<1x96xf32, #tpu.memory_space<vmem>>, vector<1x96xf32>
    %318 = vector.broadcast %317 : vector<1x96xf32> to vector<8x96xf32>
    %319 = arith.addf %316, %318 : vector<8x96xf32>
    %320 = vector.extract_strided_slice %314 {offsets = [0, 0], sizes = [8, 32], strides = [1, 1]} : vector<8x96xf32> to vector<8x32xf32>
    %321 = vector.extract_strided_slice %319 {offsets = [0, 0], sizes = [8, 32], strides = [1, 1]} : vector<8x96xf32> to vector<8x32xf32>
    %322 = arith.addf %320, %321 : vector<8x32xf32>
    %323 = arith.negf %322 : vector<8x32xf32>
    %324 = math.exp %323 : vector<8x32xf32>
    %cst_123 = arith.constant 1.000000e+00 : f32
    %325 = vector.broadcast %cst_123 : f32 to vector<8x32xf32>
    %326 = arith.addf %325, %324 : vector<8x32xf32>
    %327 = arith.divf %325, %326 : vector<8x32xf32>
    %328 = vector.extract_strided_slice %314 {offsets = [0, 32], sizes = [8, 32], strides = [1, 1]} : vector<8x96xf32> to vector<8x32xf32>
    %329 = vector.extract_strided_slice %319 {offsets = [0, 32], sizes = [8, 32], strides = [1, 1]} : vector<8x96xf32> to vector<8x32xf32>
    %330 = arith.addf %328, %329 : vector<8x32xf32>
    %331 = arith.negf %330 : vector<8x32xf32>
    %332 = math.exp %331 : vector<8x32xf32>
    %cst_124 = arith.constant 1.000000e+00 : f32
    %333 = vector.broadcast %cst_124 : f32 to vector<8x32xf32>
    %334 = arith.addf %333, %332 : vector<8x32xf32>
    %335 = arith.divf %333, %334 : vector<8x32xf32>
    %336 = vector.extract_strided_slice %314 {offsets = [0, 64], sizes = [8, 32], strides = [1, 1]} : vector<8x96xf32> to vector<8x32xf32>
    %337 = vector.extract_strided_slice %319 {offsets = [0, 64], sizes = [8, 32], strides = [1, 1]} : vector<8x96xf32> to vector<8x32xf32>
    %338 = arith.mulf %327, %337 : vector<8x32xf32>
    %339 = arith.addf %336, %338 : vector<8x32xf32>
    %340 = math.tanh %339 : vector<8x32xf32>
    %cst_125 = arith.constant 1.000000e+00 : f32
    %341 = vector.broadcast %cst_125 : f32 to vector<8x32xf32>
    %342 = arith.subf %341, %335 : vector<8x32xf32>
    %343 = arith.mulf %342, %340 : vector<8x32xf32>
    %344 = arith.mulf %335, %271 : vector<8x32xf32>
    %345 = arith.addf %343, %344 : vector<8x32xf32>
    %c0_126 = arith.constant 0 : index
    %c0_127 = arith.constant 0 : index
    %346 = vector.load %arg7[%c0_126, %c0_127] : memref<32x96xf32, #tpu.memory_space<vmem>>, vector<32x96xf32>
    %cst_128 = arith.constant dense<0.000000e+00> : vector<8x96xf32>
    %347 = tpu.matmul %345, %346, %cst_128 {dimension_numbers = #tpu.dot_dimension_numbers<[1], [0], [0], [1], [0, 0, 1, 1], [], []>} : vector<8x32xf32>, vector<32x96xf32>, vector<8x96xf32> -> vector<8x96xf32>
    %c0_129 = arith.constant 0 : index
    %c0_130 = arith.constant 0 : index
    %348 = vector.load %arg9[%c0_129, %c0_130] : memref<1x96xf32, #tpu.memory_space<vmem>>, vector<1x96xf32>
    %349 = vector.broadcast %348 : vector<1x96xf32> to vector<8x96xf32>
    %350 = arith.addf %347, %349 : vector<8x96xf32>
    %c0_131 = arith.constant 0 : index
    %c0_132 = arith.constant 0 : index
    %351 = vector.load %arg8[%c0_131, %c0_132] : memref<32x96xf32, #tpu.memory_space<vmem>>, vector<32x96xf32>
    %cst_133 = arith.constant dense<0.000000e+00> : vector<8x96xf32>
    %352 = tpu.matmul %307, %351, %cst_133 {dimension_numbers = #tpu.dot_dimension_numbers<[1], [0], [0], [1], [0, 0, 1, 1], [], []>} : vector<8x32xf32>, vector<32x96xf32>, vector<8x96xf32> -> vector<8x96xf32>
    %c0_134 = arith.constant 0 : index
    %c0_135 = arith.constant 0 : index
    %353 = vector.load %arg10[%c0_134, %c0_135] : memref<1x96xf32, #tpu.memory_space<vmem>>, vector<1x96xf32>
    %354 = vector.broadcast %353 : vector<1x96xf32> to vector<8x96xf32>
    %355 = arith.addf %352, %354 : vector<8x96xf32>
    %356 = vector.extract_strided_slice %350 {offsets = [0, 0], sizes = [8, 32], strides = [1, 1]} : vector<8x96xf32> to vector<8x32xf32>
    %357 = vector.extract_strided_slice %355 {offsets = [0, 0], sizes = [8, 32], strides = [1, 1]} : vector<8x96xf32> to vector<8x32xf32>
    %358 = arith.addf %356, %357 : vector<8x32xf32>
    %359 = arith.negf %358 : vector<8x32xf32>
    %360 = math.exp %359 : vector<8x32xf32>
    %cst_136 = arith.constant 1.000000e+00 : f32
    %361 = vector.broadcast %cst_136 : f32 to vector<8x32xf32>
    %362 = arith.addf %361, %360 : vector<8x32xf32>
    %363 = arith.divf %361, %362 : vector<8x32xf32>
    %364 = vector.extract_strided_slice %350 {offsets = [0, 32], sizes = [8, 32], strides = [1, 1]} : vector<8x96xf32> to vector<8x32xf32>
    %365 = vector.extract_strided_slice %355 {offsets = [0, 32], sizes = [8, 32], strides = [1, 1]} : vector<8x96xf32> to vector<8x32xf32>
    %366 = arith.addf %364, %365 : vector<8x32xf32>
    %367 = arith.negf %366 : vector<8x32xf32>
    %368 = math.exp %367 : vector<8x32xf32>
    %cst_137 = arith.constant 1.000000e+00 : f32
    %369 = vector.broadcast %cst_137 : f32 to vector<8x32xf32>
    %370 = arith.addf %369, %368 : vector<8x32xf32>
    %371 = arith.divf %369, %370 : vector<8x32xf32>
    %372 = vector.extract_strided_slice %350 {offsets = [0, 64], sizes = [8, 32], strides = [1, 1]} : vector<8x96xf32> to vector<8x32xf32>
    %373 = vector.extract_strided_slice %355 {offsets = [0, 64], sizes = [8, 32], strides = [1, 1]} : vector<8x96xf32> to vector<8x32xf32>
    %374 = arith.mulf %363, %373 : vector<8x32xf32>
    %375 = arith.addf %372, %374 : vector<8x32xf32>
    %376 = math.tanh %375 : vector<8x32xf32>
    %cst_138 = arith.constant 1.000000e+00 : f32
    %377 = vector.broadcast %cst_138 : f32 to vector<8x32xf32>
    %378 = arith.subf %377, %371 : vector<8x32xf32>
    %379 = arith.mulf %378, %376 : vector<8x32xf32>
    %380 = arith.mulf %371, %307 : vector<8x32xf32>
    %381 = arith.addf %379, %380 : vector<8x32xf32>
    %382 = arith.index_cast %c4_i32 : i32 to index
    %c0_139 = arith.constant 0 : index
    %c0_140 = arith.constant 0 : index
    %383 = vector.load %arg17[%382, %c0_139, %c0_140] : memref<8x8x32xf32, #tpu.memory_space<vmem>>, vector<1x8x32xf32>
    %384 = vector.shape_cast %383 : vector<1x8x32xf32> to vector<8x32xf32>
    %385 = vector.shape_cast %381 : vector<8x32xf32> to vector<1x8x32xf32>
    tpu.vector_store %arg17[%382, %c0_139, %c0_140], %385 {strides = array<i32>} : memref<8x8x32xf32, #tpu.memory_space<vmem>>, vector<1x8x32xf32>,
    %c5_i32 = arith.constant 5 : i32
    %386 = arith.index_cast %c5_i32 : i32 to index
    %c0_141 = arith.constant 0 : index
    %c0_142 = arith.constant 0 : index
    %387 = vector.load %arg16[%386, %c0_141, %c0_142] : memref<8x8x96xf32, #tpu.memory_space<vmem>>, vector<1x8x96xf32>
    %388 = vector.shape_cast %387 : vector<1x8x96xf32> to vector<8x96xf32>
    %c0_143 = arith.constant 0 : index
    %c0_144 = arith.constant 0 : index
    %389 = vector.load %arg4[%c0_143, %c0_144] : memref<32x96xf32, #tpu.memory_space<vmem>>, vector<32x96xf32>
    %cst_145 = arith.constant dense<0.000000e+00> : vector<8x96xf32>
    %390 = tpu.matmul %345, %389, %cst_145 {dimension_numbers = #tpu.dot_dimension_numbers<[1], [0], [0], [1], [0, 0, 1, 1], [], []>} : vector<8x32xf32>, vector<32x96xf32>, vector<8x96xf32> -> vector<8x96xf32>
    %c0_146 = arith.constant 0 : index
    %c0_147 = arith.constant 0 : index
    %391 = vector.load %arg6[%c0_146, %c0_147] : memref<1x96xf32, #tpu.memory_space<vmem>>, vector<1x96xf32>
    %392 = vector.broadcast %391 : vector<1x96xf32> to vector<8x96xf32>
    %393 = arith.addf %390, %392 : vector<8x96xf32>
    %394 = vector.extract_strided_slice %388 {offsets = [0, 0], sizes = [8, 32], strides = [1, 1]} : vector<8x96xf32> to vector<8x32xf32>
    %395 = vector.extract_strided_slice %393 {offsets = [0, 0], sizes = [8, 32], strides = [1, 1]} : vector<8x96xf32> to vector<8x32xf32>
    %396 = arith.addf %394, %395 : vector<8x32xf32>
    %397 = arith.negf %396 : vector<8x32xf32>
    %398 = math.exp %397 : vector<8x32xf32>
    %cst_148 = arith.constant 1.000000e+00 : f32
    %399 = vector.broadcast %cst_148 : f32 to vector<8x32xf32>
    %400 = arith.addf %399, %398 : vector<8x32xf32>
    %401 = arith.divf %399, %400 : vector<8x32xf32>
    %402 = vector.extract_strided_slice %388 {offsets = [0, 32], sizes = [8, 32], strides = [1, 1]} : vector<8x96xf32> to vector<8x32xf32>
    %403 = vector.extract_strided_slice %393 {offsets = [0, 32], sizes = [8, 32], strides = [1, 1]} : vector<8x96xf32> to vector<8x32xf32>
    %404 = arith.addf %402, %403 : vector<8x32xf32>
    %405 = arith.negf %404 : vector<8x32xf32>
    %406 = math.exp %405 : vector<8x32xf32>
    %cst_149 = arith.constant 1.000000e+00 : f32
    %407 = vector.broadcast %cst_149 : f32 to vector<8x32xf32>
    %408 = arith.addf %407, %406 : vector<8x32xf32>
    %409 = arith.divf %407, %408 : vector<8x32xf32>
    %410 = vector.extract_strided_slice %388 {offsets = [0, 64], sizes = [8, 32], strides = [1, 1]} : vector<8x96xf32> to vector<8x32xf32>
    %411 = vector.extract_strided_slice %393 {offsets = [0, 64], sizes = [8, 32], strides = [1, 1]} : vector<8x96xf32> to vector<8x32xf32>
    %412 = arith.mulf %401, %411 : vector<8x32xf32>
    %413 = arith.addf %410, %412 : vector<8x32xf32>
    %414 = math.tanh %413 : vector<8x32xf32>
    %cst_150 = arith.constant 1.000000e+00 : f32
    %415 = vector.broadcast %cst_150 : f32 to vector<8x32xf32>
    %416 = arith.subf %415, %409 : vector<8x32xf32>
    %417 = arith.mulf %416, %414 : vector<8x32xf32>
    %418 = arith.mulf %409, %345 : vector<8x32xf32>
    %419 = arith.addf %417, %418 : vector<8x32xf32>
    %c0_151 = arith.constant 0 : index
    %c0_152 = arith.constant 0 : index
    %420 = vector.load %arg7[%c0_151, %c0_152] : memref<32x96xf32, #tpu.memory_space<vmem>>, vector<32x96xf32>
    %cst_153 = arith.constant dense<0.000000e+00> : vector<8x96xf32>
    %421 = tpu.matmul %419, %420, %cst_153 {dimension_numbers = #tpu.dot_dimension_numbers<[1], [0], [0], [1], [0, 0, 1, 1], [], []>} : vector<8x32xf32>, vector<32x96xf32>, vector<8x96xf32> -> vector<8x96xf32>
    %c0_154 = arith.constant 0 : index
    %c0_155 = arith.constant 0 : index
    %422 = vector.load %arg9[%c0_154, %c0_155] : memref<1x96xf32, #tpu.memory_space<vmem>>, vector<1x96xf32>
    %423 = vector.broadcast %422 : vector<1x96xf32> to vector<8x96xf32>
    %424 = arith.addf %421, %423 : vector<8x96xf32>
    %c0_156 = arith.constant 0 : index
    %c0_157 = arith.constant 0 : index
    %425 = vector.load %arg8[%c0_156, %c0_157] : memref<32x96xf32, #tpu.memory_space<vmem>>, vector<32x96xf32>
    %cst_158 = arith.constant dense<0.000000e+00> : vector<8x96xf32>
    %426 = tpu.matmul %381, %425, %cst_158 {dimension_numbers = #tpu.dot_dimension_numbers<[1], [0], [0], [1], [0, 0, 1, 1], [], []>} : vector<8x32xf32>, vector<32x96xf32>, vector<8x96xf32> -> vector<8x96xf32>
    %c0_159 = arith.constant 0 : index
    %c0_160 = arith.constant 0 : index
    %427 = vector.load %arg10[%c0_159, %c0_160] : memref<1x96xf32, #tpu.memory_space<vmem>>, vector<1x96xf32>
    %428 = vector.broadcast %427 : vector<1x96xf32> to vector<8x96xf32>
    %429 = arith.addf %426, %428 : vector<8x96xf32>
    %430 = vector.extract_strided_slice %424 {offsets = [0, 0], sizes = [8, 32], strides = [1, 1]} : vector<8x96xf32> to vector<8x32xf32>
    %431 = vector.extract_strided_slice %429 {offsets = [0, 0], sizes = [8, 32], strides = [1, 1]} : vector<8x96xf32> to vector<8x32xf32>
    %432 = arith.addf %430, %431 : vector<8x32xf32>
    %433 = arith.negf %432 : vector<8x32xf32>
    %434 = math.exp %433 : vector<8x32xf32>
    %cst_161 = arith.constant 1.000000e+00 : f32
    %435 = vector.broadcast %cst_161 : f32 to vector<8x32xf32>
    %436 = arith.addf %435, %434 : vector<8x32xf32>
    %437 = arith.divf %435, %436 : vector<8x32xf32>
    %438 = vector.extract_strided_slice %424 {offsets = [0, 32], sizes = [8, 32], strides = [1, 1]} : vector<8x96xf32> to vector<8x32xf32>
    %439 = vector.extract_strided_slice %429 {offsets = [0, 32], sizes = [8, 32], strides = [1, 1]} : vector<8x96xf32> to vector<8x32xf32>
    %440 = arith.addf %438, %439 : vector<8x32xf32>
    %441 = arith.negf %440 : vector<8x32xf32>
    %442 = math.exp %441 : vector<8x32xf32>
    %cst_162 = arith.constant 1.000000e+00 : f32
    %443 = vector.broadcast %cst_162 : f32 to vector<8x32xf32>
    %444 = arith.addf %443, %442 : vector<8x32xf32>
    %445 = arith.divf %443, %444 : vector<8x32xf32>
    %446 = vector.extract_strided_slice %424 {offsets = [0, 64], sizes = [8, 32], strides = [1, 1]} : vector<8x96xf32> to vector<8x32xf32>
    %447 = vector.extract_strided_slice %429 {offsets = [0, 64], sizes = [8, 32], strides = [1, 1]} : vector<8x96xf32> to vector<8x32xf32>
    %448 = arith.mulf %437, %447 : vector<8x32xf32>
    %449 = arith.addf %446, %448 : vector<8x32xf32>
    %450 = math.tanh %449 : vector<8x32xf32>
    %cst_163 = arith.constant 1.000000e+00 : f32
    %451 = vector.broadcast %cst_163 : f32 to vector<8x32xf32>
    %452 = arith.subf %451, %445 : vector<8x32xf32>
    %453 = arith.mulf %452, %450 : vector<8x32xf32>
    %454 = arith.mulf %445, %381 : vector<8x32xf32>
    %455 = arith.addf %453, %454 : vector<8x32xf32>
    %456 = arith.index_cast %c5_i32 : i32 to index
    %c0_164 = arith.constant 0 : index
    %c0_165 = arith.constant 0 : index
    %457 = vector.load %arg17[%456, %c0_164, %c0_165] : memref<8x8x32xf32, #tpu.memory_space<vmem>>, vector<1x8x32xf32>
    %458 = vector.shape_cast %457 : vector<1x8x32xf32> to vector<8x32xf32>
    %459 = vector.shape_cast %455 : vector<8x32xf32> to vector<1x8x32xf32>
    tpu.vector_store %arg17[%456, %c0_164, %c0_165], %459 {strides = array<i32>} : memref<8x8x32xf32, #tpu.memory_space<vmem>>, vector<1x8x32xf32>,
    %c6_i32 = arith.constant 6 : i32
    %460 = arith.index_cast %c6_i32 : i32 to index
    %c0_166 = arith.constant 0 : index
    %c0_167 = arith.constant 0 : index
    %461 = vector.load %arg16[%460, %c0_166, %c0_167] : memref<8x8x96xf32, #tpu.memory_space<vmem>>, vector<1x8x96xf32>
    %462 = vector.shape_cast %461 : vector<1x8x96xf32> to vector<8x96xf32>
    %c0_168 = arith.constant 0 : index
    %c0_169 = arith.constant 0 : index
    %463 = vector.load %arg4[%c0_168, %c0_169] : memref<32x96xf32, #tpu.memory_space<vmem>>, vector<32x96xf32>
    %cst_170 = arith.constant dense<0.000000e+00> : vector<8x96xf32>
    %464 = tpu.matmul %419, %463, %cst_170 {dimension_numbers = #tpu.dot_dimension_numbers<[1], [0], [0], [1], [0, 0, 1, 1], [], []>} : vector<8x32xf32>, vector<32x96xf32>, vector<8x96xf32> -> vector<8x96xf32>
    %c0_171 = arith.constant 0 : index
    %c0_172 = arith.constant 0 : index
    %465 = vector.load %arg6[%c0_171, %c0_172] : memref<1x96xf32, #tpu.memory_space<vmem>>, vector<1x96xf32>
    %466 = vector.broadcast %465 : vector<1x96xf32> to vector<8x96xf32>
    %467 = arith.addf %464, %466 : vector<8x96xf32>
    %468 = vector.extract_strided_slice %462 {offsets = [0, 0], sizes = [8, 32], strides = [1, 1]} : vector<8x96xf32> to vector<8x32xf32>
    %469 = vector.extract_strided_slice %467 {offsets = [0, 0], sizes = [8, 32], strides = [1, 1]} : vector<8x96xf32> to vector<8x32xf32>
    %470 = arith.addf %468, %469 : vector<8x32xf32>
    %471 = arith.negf %470 : vector<8x32xf32>
    %472 = math.exp %471 : vector<8x32xf32>
    %cst_173 = arith.constant 1.000000e+00 : f32
    %473 = vector.broadcast %cst_173 : f32 to vector<8x32xf32>
    %474 = arith.addf %473, %472 : vector<8x32xf32>
    %475 = arith.divf %473, %474 : vector<8x32xf32>
    %476 = vector.extract_strided_slice %462 {offsets = [0, 32], sizes = [8, 32], strides = [1, 1]} : vector<8x96xf32> to vector<8x32xf32>
    %477 = vector.extract_strided_slice %467 {offsets = [0, 32], sizes = [8, 32], strides = [1, 1]} : vector<8x96xf32> to vector<8x32xf32>
    %478 = arith.addf %476, %477 : vector<8x32xf32>
    %479 = arith.negf %478 : vector<8x32xf32>
    %480 = math.exp %479 : vector<8x32xf32>
    %cst_174 = arith.constant 1.000000e+00 : f32
    %481 = vector.broadcast %cst_174 : f32 to vector<8x32xf32>
    %482 = arith.addf %481, %480 : vector<8x32xf32>
    %483 = arith.divf %481, %482 : vector<8x32xf32>
    %484 = vector.extract_strided_slice %462 {offsets = [0, 64], sizes = [8, 32], strides = [1, 1]} : vector<8x96xf32> to vector<8x32xf32>
    %485 = vector.extract_strided_slice %467 {offsets = [0, 64], sizes = [8, 32], strides = [1, 1]} : vector<8x96xf32> to vector<8x32xf32>
    %486 = arith.mulf %475, %485 : vector<8x32xf32>
    %487 = arith.addf %484, %486 : vector<8x32xf32>
    %488 = math.tanh %487 : vector<8x32xf32>
    %cst_175 = arith.constant 1.000000e+00 : f32
    %489 = vector.broadcast %cst_175 : f32 to vector<8x32xf32>
    %490 = arith.subf %489, %483 : vector<8x32xf32>
    %491 = arith.mulf %490, %488 : vector<8x32xf32>
    %492 = arith.mulf %483, %419 : vector<8x32xf32>
    %493 = arith.addf %491, %492 : vector<8x32xf32>
    %c0_176 = arith.constant 0 : index
    %c0_177 = arith.constant 0 : index
    %494 = vector.load %arg7[%c0_176, %c0_177] : memref<32x96xf32, #tpu.memory_space<vmem>>, vector<32x96xf32>
    %cst_178 = arith.constant dense<0.000000e+00> : vector<8x96xf32>
    %495 = tpu.matmul %493, %494, %cst_178 {dimension_numbers = #tpu.dot_dimension_numbers<[1], [0], [0], [1], [0, 0, 1, 1], [], []>} : vector<8x32xf32>, vector<32x96xf32>, vector<8x96xf32> -> vector<8x96xf32>
    %c0_179 = arith.constant 0 : index
    %c0_180 = arith.constant 0 : index
    %496 = vector.load %arg9[%c0_179, %c0_180] : memref<1x96xf32, #tpu.memory_space<vmem>>, vector<1x96xf32>
    %497 = vector.broadcast %496 : vector<1x96xf32> to vector<8x96xf32>
    %498 = arith.addf %495, %497 : vector<8x96xf32>
    %c0_181 = arith.constant 0 : index
    %c0_182 = arith.constant 0 : index
    %499 = vector.load %arg8[%c0_181, %c0_182] : memref<32x96xf32, #tpu.memory_space<vmem>>, vector<32x96xf32>
    %cst_183 = arith.constant dense<0.000000e+00> : vector<8x96xf32>
    %500 = tpu.matmul %455, %499, %cst_183 {dimension_numbers = #tpu.dot_dimension_numbers<[1], [0], [0], [1], [0, 0, 1, 1], [], []>} : vector<8x32xf32>, vector<32x96xf32>, vector<8x96xf32> -> vector<8x96xf32>
    %c0_184 = arith.constant 0 : index
    %c0_185 = arith.constant 0 : index
    %501 = vector.load %arg10[%c0_184, %c0_185] : memref<1x96xf32, #tpu.memory_space<vmem>>, vector<1x96xf32>
    %502 = vector.broadcast %501 : vector<1x96xf32> to vector<8x96xf32>
    %503 = arith.addf %500, %502 : vector<8x96xf32>
    %504 = vector.extract_strided_slice %498 {offsets = [0, 0], sizes = [8, 32], strides = [1, 1]} : vector<8x96xf32> to vector<8x32xf32>
    %505 = vector.extract_strided_slice %503 {offsets = [0, 0], sizes = [8, 32], strides = [1, 1]} : vector<8x96xf32> to vector<8x32xf32>
    %506 = arith.addf %504, %505 : vector<8x32xf32>
    %507 = arith.negf %506 : vector<8x32xf32>
    %508 = math.exp %507 : vector<8x32xf32>
    %cst_186 = arith.constant 1.000000e+00 : f32
    %509 = vector.broadcast %cst_186 : f32 to vector<8x32xf32>
    %510 = arith.addf %509, %508 : vector<8x32xf32>
    %511 = arith.divf %509, %510 : vector<8x32xf32>
    %512 = vector.extract_strided_slice %498 {offsets = [0, 32], sizes = [8, 32], strides = [1, 1]} : vector<8x96xf32> to vector<8x32xf32>
    %513 = vector.extract_strided_slice %503 {offsets = [0, 32], sizes = [8, 32], strides = [1, 1]} : vector<8x96xf32> to vector<8x32xf32>
    %514 = arith.addf %512, %513 : vector<8x32xf32>
    %515 = arith.negf %514 : vector<8x32xf32>
    %516 = math.exp %515 : vector<8x32xf32>
    %cst_187 = arith.constant 1.000000e+00 : f32
    %517 = vector.broadcast %cst_187 : f32 to vector<8x32xf32>
    %518 = arith.addf %517, %516 : vector<8x32xf32>
    %519 = arith.divf %517, %518 : vector<8x32xf32>
    %520 = vector.extract_strided_slice %498 {offsets = [0, 64], sizes = [8, 32], strides = [1, 1]} : vector<8x96xf32> to vector<8x32xf32>
    %521 = vector.extract_strided_slice %503 {offsets = [0, 64], sizes = [8, 32], strides = [1, 1]} : vector<8x96xf32> to vector<8x32xf32>
    %522 = arith.mulf %511, %521 : vector<8x32xf32>
    %523 = arith.addf %520, %522 : vector<8x32xf32>
    %524 = math.tanh %523 : vector<8x32xf32>
    %cst_188 = arith.constant 1.000000e+00 : f32
    %525 = vector.broadcast %cst_188 : f32 to vector<8x32xf32>
    %526 = arith.subf %525, %519 : vector<8x32xf32>
    %527 = arith.mulf %526, %524 : vector<8x32xf32>
    %528 = arith.mulf %519, %455 : vector<8x32xf32>
    %529 = arith.addf %527, %528 : vector<8x32xf32>
    %530 = arith.index_cast %c6_i32 : i32 to index
    %c0_189 = arith.constant 0 : index
    %c0_190 = arith.constant 0 : index
    %531 = vector.load %arg17[%530, %c0_189, %c0_190] : memref<8x8x32xf32, #tpu.memory_space<vmem>>, vector<1x8x32xf32>
    %532 = vector.shape_cast %531 : vector<1x8x32xf32> to vector<8x32xf32>
    %533 = vector.shape_cast %529 : vector<8x32xf32> to vector<1x8x32xf32>
    tpu.vector_store %arg17[%530, %c0_189, %c0_190], %533 {strides = array<i32>} : memref<8x8x32xf32, #tpu.memory_space<vmem>>, vector<1x8x32xf32>,
    %c7_i32 = arith.constant 7 : i32
    %534 = arith.index_cast %c7_i32 : i32 to index
    %c0_191 = arith.constant 0 : index
    %c0_192 = arith.constant 0 : index
    %535 = vector.load %arg16[%534, %c0_191, %c0_192] : memref<8x8x96xf32, #tpu.memory_space<vmem>>, vector<1x8x96xf32>
    %536 = vector.shape_cast %535 : vector<1x8x96xf32> to vector<8x96xf32>
    %c0_193 = arith.constant 0 : index
    %c0_194 = arith.constant 0 : index
    %537 = vector.load %arg4[%c0_193, %c0_194] : memref<32x96xf32, #tpu.memory_space<vmem>>, vector<32x96xf32>
    %cst_195 = arith.constant dense<0.000000e+00> : vector<8x96xf32>
    %538 = tpu.matmul %493, %537, %cst_195 {dimension_numbers = #tpu.dot_dimension_numbers<[1], [0], [0], [1], [0, 0, 1, 1], [], []>} : vector<8x32xf32>, vector<32x96xf32>, vector<8x96xf32> -> vector<8x96xf32>
    %c0_196 = arith.constant 0 : index
    %c0_197 = arith.constant 0 : index
    %539 = vector.load %arg6[%c0_196, %c0_197] : memref<1x96xf32, #tpu.memory_space<vmem>>, vector<1x96xf32>
    %540 = vector.broadcast %539 : vector<1x96xf32> to vector<8x96xf32>
    %541 = arith.addf %538, %540 : vector<8x96xf32>
    %542 = vector.extract_strided_slice %536 {offsets = [0, 0], sizes = [8, 32], strides = [1, 1]} : vector<8x96xf32> to vector<8x32xf32>
    %543 = vector.extract_strided_slice %541 {offsets = [0, 0], sizes = [8, 32], strides = [1, 1]} : vector<8x96xf32> to vector<8x32xf32>
    %544 = arith.addf %542, %543 : vector<8x32xf32>
    %545 = arith.negf %544 : vector<8x32xf32>
    %546 = math.exp %545 : vector<8x32xf32>
    %cst_198 = arith.constant 1.000000e+00 : f32
    %547 = vector.broadcast %cst_198 : f32 to vector<8x32xf32>
    %548 = arith.addf %547, %546 : vector<8x32xf32>
    %549 = arith.divf %547, %548 : vector<8x32xf32>
    %550 = vector.extract_strided_slice %536 {offsets = [0, 32], sizes = [8, 32], strides = [1, 1]} : vector<8x96xf32> to vector<8x32xf32>
    %551 = vector.extract_strided_slice %541 {offsets = [0, 32], sizes = [8, 32], strides = [1, 1]} : vector<8x96xf32> to vector<8x32xf32>
    %552 = arith.addf %550, %551 : vector<8x32xf32>
    %553 = arith.negf %552 : vector<8x32xf32>
    %554 = math.exp %553 : vector<8x32xf32>
    %cst_199 = arith.constant 1.000000e+00 : f32
    %555 = vector.broadcast %cst_199 : f32 to vector<8x32xf32>
    %556 = arith.addf %555, %554 : vector<8x32xf32>
    %557 = arith.divf %555, %556 : vector<8x32xf32>
    %558 = vector.extract_strided_slice %536 {offsets = [0, 64], sizes = [8, 32], strides = [1, 1]} : vector<8x96xf32> to vector<8x32xf32>
    %559 = vector.extract_strided_slice %541 {offsets = [0, 64], sizes = [8, 32], strides = [1, 1]} : vector<8x96xf32> to vector<8x32xf32>
    %560 = arith.mulf %549, %559 : vector<8x32xf32>
    %561 = arith.addf %558, %560 : vector<8x32xf32>
    %562 = math.tanh %561 : vector<8x32xf32>
    %cst_200 = arith.constant 1.000000e+00 : f32
    %563 = vector.broadcast %cst_200 : f32 to vector<8x32xf32>
    %564 = arith.subf %563, %557 : vector<8x32xf32>
    %565 = arith.mulf %564, %562 : vector<8x32xf32>
    %566 = arith.mulf %557, %493 : vector<8x32xf32>
    %567 = arith.addf %565, %566 : vector<8x32xf32>
    %c0_201 = arith.constant 0 : index
    %c0_202 = arith.constant 0 : index
    %568 = vector.load %arg7[%c0_201, %c0_202] : memref<32x96xf32, #tpu.memory_space<vmem>>, vector<32x96xf32>
    %cst_203 = arith.constant dense<0.000000e+00> : vector<8x96xf32>
    %569 = tpu.matmul %567, %568, %cst_203 {dimension_numbers = #tpu.dot_dimension_numbers<[1], [0], [0], [1], [0, 0, 1, 1], [], []>} : vector<8x32xf32>, vector<32x96xf32>, vector<8x96xf32> -> vector<8x96xf32>
    %c0_204 = arith.constant 0 : index
    %c0_205 = arith.constant 0 : index
    %570 = vector.load %arg9[%c0_204, %c0_205] : memref<1x96xf32, #tpu.memory_space<vmem>>, vector<1x96xf32>
    %571 = vector.broadcast %570 : vector<1x96xf32> to vector<8x96xf32>
    %572 = arith.addf %569, %571 : vector<8x96xf32>
    %c0_206 = arith.constant 0 : index
    %c0_207 = arith.constant 0 : index
    %573 = vector.load %arg8[%c0_206, %c0_207] : memref<32x96xf32, #tpu.memory_space<vmem>>, vector<32x96xf32>
    %cst_208 = arith.constant dense<0.000000e+00> : vector<8x96xf32>
    %574 = tpu.matmul %529, %573, %cst_208 {dimension_numbers = #tpu.dot_dimension_numbers<[1], [0], [0], [1], [0, 0, 1, 1], [], []>} : vector<8x32xf32>, vector<32x96xf32>, vector<8x96xf32> -> vector<8x96xf32>
    %c0_209 = arith.constant 0 : index
    %c0_210 = arith.constant 0 : index
    %575 = vector.load %arg10[%c0_209, %c0_210] : memref<1x96xf32, #tpu.memory_space<vmem>>, vector<1x96xf32>
    %576 = vector.broadcast %575 : vector<1x96xf32> to vector<8x96xf32>
    %577 = arith.addf %574, %576 : vector<8x96xf32>
    %578 = vector.extract_strided_slice %572 {offsets = [0, 0], sizes = [8, 32], strides = [1, 1]} : vector<8x96xf32> to vector<8x32xf32>
    %579 = vector.extract_strided_slice %577 {offsets = [0, 0], sizes = [8, 32], strides = [1, 1]} : vector<8x96xf32> to vector<8x32xf32>
    %580 = arith.addf %578, %579 : vector<8x32xf32>
    %581 = arith.negf %580 : vector<8x32xf32>
    %582 = math.exp %581 : vector<8x32xf32>
    %cst_211 = arith.constant 1.000000e+00 : f32
    %583 = vector.broadcast %cst_211 : f32 to vector<8x32xf32>
    %584 = arith.addf %583, %582 : vector<8x32xf32>
    %585 = arith.divf %583, %584 : vector<8x32xf32>
    %586 = vector.extract_strided_slice %572 {offsets = [0, 32], sizes = [8, 32], strides = [1, 1]} : vector<8x96xf32> to vector<8x32xf32>
    %587 = vector.extract_strided_slice %577 {offsets = [0, 32], sizes = [8, 32], strides = [1, 1]} : vector<8x96xf32> to vector<8x32xf32>
    %588 = arith.addf %586, %587 : vector<8x32xf32>
    %589 = arith.negf %588 : vector<8x32xf32>
    %590 = math.exp %589 : vector<8x32xf32>
    %cst_212 = arith.constant 1.000000e+00 : f32
    %591 = vector.broadcast %cst_212 : f32 to vector<8x32xf32>
    %592 = arith.addf %591, %590 : vector<8x32xf32>
    %593 = arith.divf %591, %592 : vector<8x32xf32>
    %594 = vector.extract_strided_slice %572 {offsets = [0, 64], sizes = [8, 32], strides = [1, 1]} : vector<8x96xf32> to vector<8x32xf32>
    %595 = vector.extract_strided_slice %577 {offsets = [0, 64], sizes = [8, 32], strides = [1, 1]} : vector<8x96xf32> to vector<8x32xf32>
    %596 = arith.mulf %585, %595 : vector<8x32xf32>
    %597 = arith.addf %594, %596 : vector<8x32xf32>
    %598 = math.tanh %597 : vector<8x32xf32>
    %cst_213 = arith.constant 1.000000e+00 : f32
    %599 = vector.broadcast %cst_213 : f32 to vector<8x32xf32>
    %600 = arith.subf %599, %593 : vector<8x32xf32>
    %601 = arith.mulf %600, %598 : vector<8x32xf32>
    %602 = arith.mulf %593, %529 : vector<8x32xf32>
    %603 = arith.addf %601, %602 : vector<8x32xf32>
    %604 = arith.index_cast %c7_i32 : i32 to index
    %c0_214 = arith.constant 0 : index
    %c0_215 = arith.constant 0 : index
    %605 = vector.load %arg17[%604, %c0_214, %c0_215] : memref<8x8x32xf32, #tpu.memory_space<vmem>>, vector<1x8x32xf32>
    %606 = vector.shape_cast %605 : vector<1x8x32xf32> to vector<8x32xf32>
    %607 = vector.shape_cast %603 : vector<8x32xf32> to vector<1x8x32xf32>
    tpu.vector_store %arg17[%604, %c0_214, %c0_215], %607 {strides = array<i32>} : memref<8x8x32xf32, #tpu.memory_space<vmem>>, vector<1x8x32xf32>,
    %c8_i32 = arith.constant 8 : i32
    %c0_216 = arith.constant 0 : index
    %c0_217 = arith.constant 0 : index
    %c0_218 = arith.constant 0 : index
    %608 = vector.load %arg15[%c0_216, %c0_217, %c0_218] : memref<2x8x32xf32, #tpu.memory_space<vmem>>, vector<1x8x32xf32>
    %609 = vector.shape_cast %608 : vector<1x8x32xf32> to vector<8x32xf32>
    %610 = vector.shape_cast %567 : vector<8x32xf32> to vector<1x8x32xf32>
    tpu.vector_store %arg15[%c0_216, %c0_217, %c0_218], %610 {strides = array<i32>} : memref<2x8x32xf32, #tpu.memory_space<vmem>>, vector<1x8x32xf32>,
    %c1_219 = arith.constant 1 : index
    %c0_220 = arith.constant 0 : index
    %c0_221 = arith.constant 0 : index
    %611 = vector.load %arg15[%c1_219, %c0_220, %c0_221] : memref<2x8x32xf32, #tpu.memory_space<vmem>>, vector<1x8x32xf32>
    %612 = vector.shape_cast %611 : vector<1x8x32xf32> to vector<8x32xf32>
    %613 = vector.shape_cast %603 : vector<8x32xf32> to vector<1x8x32xf32>
    tpu.vector_store %arg15[%c1_219, %c0_220, %c0_221], %613 {strides = array<i32>} : memref<2x8x32xf32, #tpu.memory_space<vmem>>, vector<1x8x32xf32>,
    %c0_222 = arith.constant 0 : index
    %c0_223 = arith.constant 0 : index
    %c0_224 = arith.constant 0 : index
    %614 = vector.load %arg17[%c0_222, %c0_223, %c0_224] : memref<8x8x32xf32, #tpu.memory_space<vmem>>, vector<8x8x32xf32>
    %615 = vector.shape_cast %614 : vector<8x8x32xf32> to vector<64x32xf32>
    %c0_225 = arith.constant 0 : index
    %c0_226 = arith.constant 0 : index
    %616 = vector.load %arg12[%c0_225, %c0_226] : memref<32x128xf32, #tpu.memory_space<vmem>>, vector<32x128xf32>
    %cst_227 = arith.constant dense<0.000000e+00> : vector<64x128xf32>
    %617 = tpu.matmul %615, %616, %cst_227 {dimension_numbers = #tpu.dot_dimension_numbers<[1], [0], [0], [1], [0, 0, 1, 1], [], []>} : vector<64x32xf32>, vector<32x128xf32>, vector<64x128xf32> -> vector<64x128xf32>
    %c0_228 = arith.constant 0 : index
    %c0_229 = arith.constant 0 : index
    %618 = vector.load %arg13[%c0_228, %c0_229] : memref<1x128xf32, #tpu.memory_space<vmem>>, vector<1x128xf32>
    %619 = vector.broadcast %618 : vector<1x128xf32> to vector<64x128xf32>
    %620 = arith.addf %617, %619 : vector<64x128xf32>
    %621 = tpu.iota {dimensions = array<i32: 1>} : vector<1x128xi32>
    %c80_i32 = arith.constant 80 : i32
    %622 = vector.broadcast %c80_i32 : i32 to vector<1x128xi32>
    %623 = arith.cmpi sge, %621, %622 : vector<1x128xi32>
    %c100_i32 = arith.constant 100 : i32
    %624 = vector.broadcast %c100_i32 : i32 to vector<1x128xi32>
    %625 = arith.cmpi slt, %621, %624 : vector<1x128xi32>
    %626 = arith.andi %623, %625 : vector<1x128xi1>
    %627 = math.tanh %620 : vector<64x128xf32>
    %628 = vector.shape_cast %626 : vector<1x128xi1> to vector<1x128xi1>
    %629 = vector.broadcast %628 : vector<1x128xi1> to vector<64x128xi1>
    %630 = arith.select %629, %627, %620 : vector<64x128xi1>, vector<64x128xf32>
    %631 = vector.shape_cast %630 : vector<64x128xf32> to vector<8x8x128xf32>
    %c0_230 = arith.constant 0 : index
    %c0_231 = arith.constant 0 : index
    %c0_232 = arith.constant 0 : index
    %632 = vector.load %arg14[%c0_230, %c0_231, %c0_232] : memref<8x8x128xf32, #tpu.memory_space<vmem>>, vector<8x8x128xf32>
    tpu.vector_store %arg14[%c0_230, %c0_231, %c0_232], %631 {strides = array<i32>} : memref<8x8x128xf32, #tpu.memory_space<vmem>>, vector<8x8x128xf32>,
    return
  }
  func.func @transform_0(%arg0: i32, %arg1: i32) -> (i32, i32, i32) {
    %c0_i32 = arith.constant 0 : i32
    %c0_i32_0 = arith.constant 0 : i32
    return %arg1, %arg0, %c0_i32 : i32, i32, i32
  }
  func.func @transform_1(%arg0: i32, %arg1: i32) -> (i32, i32) {
    %c0_i32 = arith.constant 0 : i32
    %c0_i32_0 = arith.constant 0 : i32
    %c0_i32_1 = arith.constant 0 : i32
    return %c0_i32, %c0_i32_0 : i32, i32
  }
  func.func @transform_2(%arg0: i32, %arg1: i32) -> (i32, i32) {
    %c0_i32 = arith.constant 0 : i32
    %c0_i32_0 = arith.constant 0 : i32
    %c0_i32_1 = arith.constant 0 : i32
    return %c0_i32, %c0_i32_0 : i32, i32
  }
  func.func @transform_3(%arg0: i32, %arg1: i32) -> (i32, i32) {
    %c0_i32 = arith.constant 0 : i32
    %c0_i32_0 = arith.constant 0 : i32
    %c0_i32_1 = arith.constant 0 : i32
    return %c0_i32, %c0_i32_0 : i32, i32
  }
  func.func @transform_4(%arg0: i32, %arg1: i32) -> (i32, i32) {
    %c0_i32 = arith.constant 0 : i32
    %c0_i32_0 = arith.constant 0 : i32
    %c0_i32_1 = arith.constant 0 : i32
    return %c0_i32, %c0_i32_0 : i32, i32
  }
  func.func @transform_5(%arg0: i32, %arg1: i32) -> (i32, i32) {
    %c0_i32 = arith.constant 0 : i32
    %c0_i32_0 = arith.constant 0 : i32
    %c0_i32_1 = arith.constant 0 : i32
    return %c0_i32, %c0_i32_0 : i32, i32
  }
  func.func @transform_6(%arg0: i32, %arg1: i32) -> (i32, i32) {
    %c0_i32 = arith.constant 0 : i32
    %c0_i32_0 = arith.constant 0 : i32
    %c0_i32_1 = arith.constant 0 : i32
    return %c0_i32, %c0_i32_0 : i32, i32
  }
  func.func @transform_7(%arg0: i32, %arg1: i32) -> (i32, i32) {
    %c0_i32 = arith.constant 0 : i32
    %c0_i32_0 = arith.constant 0 : i32
    %c0_i32_1 = arith.constant 0 : i32
    return %c0_i32, %c0_i32_0 : i32, i32
  }
  func.func @transform_8(%arg0: i32, %arg1: i32) -> (i32, i32) {
    %c0_i32 = arith.constant 0 : i32
    %c0_i32_0 = arith.constant 0 : i32
    %c0_i32_1 = arith.constant 0 : i32
    return %c0_i32, %c0_i32_0 : i32, i32
  }
  func.func @transform_9(%arg0: i32, %arg1: i32) -> (i32, i32, i32) {
    %c0_i32 = arith.constant 0 : i32
    %c0_i32_0 = arith.constant 0 : i32
    %c0_i32_1 = arith.constant 0 : i32
    return %c0_i32, %arg0, %c0_i32_0 : i32, i32, i32
  }
  func.func @transform_10(%arg0: i32, %arg1: i32) -> (i32, i32) {
    %c0_i32 = arith.constant 0 : i32
    %c0_i32_0 = arith.constant 0 : i32
    %c0_i32_1 = arith.constant 0 : i32
    return %c0_i32, %c0_i32_0 : i32, i32
  }
  func.func @transform_11(%arg0: i32, %arg1: i32) -> (i32, i32) {
    %c0_i32 = arith.constant 0 : i32
    %c0_i32_0 = arith.constant 0 : i32
    %c0_i32_1 = arith.constant 0 : i32
    return %c0_i32, %c0_i32_0 : i32, i32
  }
  func.func @transform_12(%arg0: i32, %arg1: i32) -> (i32, i32, i32) {
    %c0_i32 = arith.constant 0 : i32
    %c0_i32_0 = arith.constant 0 : i32
    return %arg1, %arg0, %c0_i32 : i32, i32, i32
  }
  func.func @transform_13(%arg0: i32, %arg1: i32) -> (i32, i32, i32) {
    %c0_i32 = arith.constant 0 : i32
    %c0_i32_0 = arith.constant 0 : i32
    %c0_i32_1 = arith.constant 0 : i32
    return %c0_i32, %arg0, %c0_i32_0 : i32, i32, i32
  }
}

</mosaic_0001>

<bundles_post_ra>
// kernel: gaussian_writing_gru_forward.1
= control target key start
LH: loop header
LB: loop body
LE: loop exit
PB: predicated region body
PF: predicated region fallthrough
CT: control target
= control target key end

     0   :  { %vm93_vm0 = vcmask 1042432   ;;  %vm68_vm1 = vcmask 23552   ;;  %vm49_vm2 = vcmask 261120   ;;  %v3689_v13 = vmov 0.0|0.0   ;;  %s3692_s23 = smov 64   ;;  %s3693_s24 = smov 96   ;;  %s4370_s1 = inlined_call_operand.vmem [shape: f32[3,96], index: 1, kind: input, shape index: {}]   ;;  %s4371_s0 = inlined_call_operand.vmem [shape: f32[8,8,3], index: 0, kind: input, shape index: {}]   ;;  %s4372_s2 = inlined_call_operand.vmem [shape: f32[32,96], index: 2, kind: input, shape index: {}]   ;;  %s4373_s9 = inlined_call_operand.vmem [shape: f32[2,8,32], index: 9, kind: input, shape index: {}, may-alias: {9,13}]   ;;  %s4374_s13 = inlined_call_operand.vmem [shape: f32[2,8,32], index: 13, kind: output, shape index: {1}, may-alias: {9,13}]   ;;  %s4375_s3 = inlined_call_operand.vmem [shape: f32[1,96], index: 3, kind: input, shape index: {}]   ;;  %s4376_s4 = inlined_call_operand.vmem [shape: f32[1,96], index: 4, kind: input, shape index: {}]   ;;  %s4377_s6 = inlined_call_operand.vmem [shape: f32[32,96], index: 6, kind: input, shape index: {}]   ;;  %s4378_s5 = inlined_call_operand.vmem [shape: f32[32,96], index: 5, kind: input, shape index: {}]   ;;  %s4379_s8 = inlined_call_operand.vmem [shape: f32[1,96], index: 8, kind: input, shape index: {}]   ;;  %s4380_s7 = inlined_call_operand.vmem [shape: f32[1,96], index: 7, kind: input, shape index: {}]   ;;  %s4381_s10 = inlined_call_operand.vmem [shape: f32[32,128], index: 10, kind: input, shape index: {}]   ;;  %s4382_s11 = inlined_call_operand.vmem [shape: f32[1,128], index: 11, kind: input, shape index: {}]   ;;  %s4383_s12 = inlined_call_operand.vmem [shape: f32[8,8,128], index: 12, kind: output, shape index: {0}]  }
   0x1   :  { %v60_v0 = vld [vmem:[%s4370_s1] sm:$0x7]  ;;  %v53_v3 = vld [vmem:[%s4371_s0 + $0x8] sm:$0xff]  ;;  %v58_v7 = vld [vmem:[%s4371_s0 + $0x30] sm:$0xff]  ;;  %vm3690_vm3 = vmmov 0   ;;  %v3691_v16 = vmov 0.0  }
   0x2   :  { %v52_v1 = vld [vmem:[%s4371_s0] sm:$0xff]  ;;  %3119 = vmatprep.subr.msk.mxu0 %vm93_vm0, %v60_v0  ;;  %3569 = vmatprep.subr.msk.mxu1 %vm93_vm0, %v60_v0  ;;  %v57_v4 = vld [vmem:[%s4371_s0 + $0x28] sm:$0xff]  ;;  %v217_v9 = vld [vmem:[%s4372_s2 + $0x10] sm:$0xff]  ;;  %vm202_vm4 = vcmask 785408   ;;  %s3694_s27 = smov 32  }
   0x3   :  { %v56_v2 = vld [vmem:[%s4371_s0 + $0x20] sm:$0xff]  ;;  %3120 = vmatpush3.msk.msra.mxu0 %vm93_vm0, %v60_v0  ;;  %3570 = vmatpush3.msk.msra.mxu1 %vm93_vm0, %v60_v0  ;;  %v216_v6 = vld [vmem:[%s4372_s2 + $0x8] sm:$0xff]  ;;  %v218_v10 = vld [vmem:[%s4372_s2 + $0x18] sm:$0xff] }
   0x4   :  { %v215_v5 = vld [vmem:[%s4372_s2] sm:$0xff]  ;;  %3121 = vmatprep.mubr.msk.f32.mxu0 %vm68_vm1, %v52_v1  ;;  %3127 = vmatprep.mubr.msk.f32.mxu1 %vm68_vm1, %v56_v2  ;;  %v48_v12 = vld [vmem:[%s4373_s9 + $0x8] sm:$0xff]  ;;  %v59_v14 = vld [vmem:[%s4371_s0 + $0x38] sm:$0xff]  ;;  %v3825_v15 = vpack.c.bf16 %v218_v10, %v217_v9 }
   0x5   :  { %v3795_v8 = vpack.c.bf16 %v216_v6, %v215_v5  ;;  %v47_v11 = vld [vmem:[%s4373_s9] sm:$0xff]  ;;  %3122 = vmatmul.mubr.msk.f32.vlgmr.msra.gmra.mrb[0].mxu0 %vm68_vm1, %v53_v3  ;;  %3128 = vmatmul.mubr.msk.f32.vlgmr.msra.gmra.mrb[0].mxu1 %vm68_vm1, %v57_v4  ;;  %v54_v45 = vld [vmem:[%s4371_s0 + $0x10] sm:$0xff]  ;;  %v55_v46 = vld [vmem:[%s4371_s0 + $0x18] sm:$0xff] }
   0x6   :  { %50 = vst.msk [vmem:[%s4374_s13] sm:$0xff] %vm49_vm2, %v47_v11  ;;  %3417 = vmatprep.subr.bf16.mxu1 %v3689_v13  ;;  %3130 = vmatprep.mubr.msk.f32.mxu1 %vm68_vm1, %v58_v7  ;;  %51 = vst.msk [vmem:[%s4374_s13 + $0x8] sm:$0xff] %vm49_vm2, %v48_v12  ;;  %v3846_v18 = vld [vmem:[%s4375_s3] ss:$0 sm:$0xff]  ;;  %v416_v48 = vld [vmem:[%s4377_s6 + $0x8] sm:$0xff] }
   0x7   :  { %3419 = vmatpush3.bf16.msra.mxu1 %v3795_v8  ;;  %3429 = vmatprep.subr.bf16.mxu0 %v3689_v13  ;;  %v3862_v31 = vld [vmem:[%s4376_s4] ss:$0 sm:$0xff]  ;;  %v417_v49 = vld [vmem:[%s4377_s6 + $0x10] sm:$0xff]  ;;  %v418_v51 = vld [vmem:[%s4377_s6 + $0x18] sm:$0xff] }
   0x8   :  { %3420 = vmatprep.subr.bf16.mxu1 %v3689_v13  ;;  %v415_v47 = vld [vmem:[%s4377_s6] sm:$0xff]  ;;  %3124 = vmatprep.mubr.msk.f32.mxu0 %vm68_vm1, %v54_v45  ;;  %v330_v53 = vld [vmem:[%s4378_s5 + $0x8] sm:$0xff]  ;;  %v331_v55 = vld [vmem:[%s4378_s5 + $0x10] sm:$0xff]  ;;  %v3907_v58 = vpack.c.bf16 %v418_v51, %v417_v49 }
   0x9   :  { %3131 = vmatmul.mubr.msk.f32.gmra.mrb[2].mxu1 %vm68_vm1, %v59_v14  ;;  %v3884_v50 = vpack.c.bf16 %v416_v48, %v415_v47  ;;  %3125 = vmatmul.mubr.msk.f32.gmra.mrb[2].mxu0 %vm68_vm1, %v55_v46  ;;  %v329_v52 = vld [vmem:[%s4378_s5] sm:$0xff]  ;;  %v332_v56 = vld [vmem:[%s4378_s5 + $0x18] sm:$0xff] }
   0xa   :  { %3141 = vmatprep.mubr.msk.f32.mxu1 %vm3690_vm3, %v3691_v16  ;;  %3163 = vmatprep.mubr.msk.f32.mxu0 %vm3690_vm3, %v3691_v16  ;;  %v3898_v54 = vpack.c.bf16 %v330_v53, %v329_v52  ;;  %v3912_v59 = vpack.c.bf16 %v332_v56, %v331_v55  ;;  %v3945_v7 = vld [vmem:[%s4379_s8] ss:$0 sm:$0xff] }
   0xb   :  { %3422 = vmatpush3.bf16.msra.mxu1 %v3825_v15  ;;  %3431 = vmatpush3.bf16.msra.mxu0 %v3884_v50  ;;  %v3966_v14 = vld [vmem:[%s4380_s7] ss:$0 sm:$0xff] }
   0xc   :  { %3423 = vmatprep.subr.bf16.mxu1 %v3689_v13  ;;  %3432 = vmatprep.subr.bf16.mxu0 %v3689_v13 }
   0xd   :  { %v3836_v17 = vld [vmem:[%s4374_s13] sm:$0xff]  ;;  %v3919_v60 = vld [vmem:[%s4374_s13 + $0x8] sm:$0xff] }
   0xe   :  { %3142 = vmatmul.mubr.msk.f32.vlgmr.msra.gmra.mrb[4].mxu1 %vm49_vm2, %v3836_v17 }
   0xf   :  { %3152 = vmatprep.mubr.msk.f32.mxu1 %vm3690_vm3, %v3691_v16  ;;  %3425 = vmatpush3.bf16.msra.mxu1 %v3898_v54 }
  0x10   :  { %3426 = vmatprep.subr.bf16.mxu1 %v3689_v13  ;;  %3434 = vmatpush3.bf16.msra.mxu0 %v3907_v58 }
  0x11   :  { %3441 = vmatprep.subr.bf16.mxu0 %v3689_v13 }
  0x13   :  { %3428 = vmatpush3.bf16.msra.mxu1 %v3912_v59  ;;  %3164 = vmatmul.mubr.msk.f32.vlgmr.msra.gmra.mrb[4].mxu0 %vm49_vm2, %v3919_v60 }
  0x14   :  { %3435 = vmatprep.subr.bf16.mxu1 %v3689_v13  ;;  %3443 = vmatpush3.bf16.msra.mxu0 %v3898_v54 }
  0x15   :  { %3185 = vmatprep.mubr.msk.f32.mxu0 %vm3690_vm3, %v3691_v16  ;;  %3444 = vmatprep.subr.bf16.mxu0 %v3689_v13 }
  0x18   :  { %3446 = vmatpush3.bf16.msra.mxu0 %v3912_v59 }
  0x19   :  { %3453 = vmatprep.subr.bf16.mxu0 %v3689_v13 }
  0xd8   :  { %v3123_v19 = vpop.f32.mrb[0].mxu0  ;;  %v3129_v20 = vpop.f32.mrb[0].mxu1 }
  0xd9   :  { %v169_v21 = vadd.f32 %v3123_v19, %v3846_v18  ;;  %v189_v22 = vadd.f32 %v3129_v20, %v3846_v18  ;;  %v163_v23 = vpop.f32.mrb[1].mxu0  ;;  %v183_v24 = vpop.f32.mrb[1].mxu1 }
  0xda   :  { %v164_v25 = vadd.f32 %v3846_v18, %v163_v23  ;;  %v184_v26 = vadd.f32 %v3846_v18, %v183_v24 }
  0xdb   :  { %204 = vst.msk [vmem:[#allocation2 + $0x8] sm:$0xff] %vm202_vm4, %v169_v21  ;;  %208 = vst.msk [vmem:[#allocation2 + $0x28] sm:$0xff] %vm202_vm4, %v189_v22 }
  0xdc   :  { %203 = vst.msk [vmem:[#allocation2] sm:$0xff] %vm202_vm4, %v164_v25  ;;  %207 = vst.msk [vmem:[#allocation2 + $0x20] sm:$0xff] %vm202_vm4, %v184_v26  ;;  %v3132_v27 = vpop.f32.mrb[2].mxu1  ;;  %v3126_v3 = vpop.f32.mrb[2].mxu0 }
  0xdd   :  { %v199_v28 = vadd.f32 %v3132_v27, %v3846_v18  ;;  %v193_v29 = vpop.f32.mrb[3].mxu1  ;;  %v179_v4 = vadd.f32 %v3126_v3, %v3846_v18  ;;  %v173_v5 = vpop.f32.mrb[3].mxu0 }
  0xde   :  { %v194_v30 = vadd.f32 %v3846_v18, %v193_v29  ;;  %v174_v6 = vadd.f32 %v3846_v18, %v173_v5 }
  0xdf   :  { %210 = vst.msk [vmem:[#allocation2 + $0x38] sm:$0xff] %vm202_vm4, %v199_v28  ;;  %206 = vst.msk [vmem:[#allocation2 + $0x18] sm:$0xff] %vm202_vm4, %v179_v4 }
  0xe0   :  { %209 = vst.msk [vmem:[#allocation2 + $0x30] sm:$0xff] %vm202_vm4, %v194_v30  ;;  %205 = vst.msk [vmem:[#allocation2 + $0x10] sm:$0xff] %vm202_vm4, %v174_v6 }
  0xe1   :  { %v296_v32 = vpop.f32.mrb[4].mxu1 }
  0xe2   :  { %v297_v33 = vadd.f32 %v3862_v31, %v296_v32  ;;  %v3143_v34 = vpop.f32.mrb[5].mxu1  ;;  %v534_v30 = vld [vmem:[#allocation2 + $0x8] sm:$0xff] }
  0xe3   :  { %v214_v35 = vld [vmem:[#allocation2] sm:$0xff] }
  0xe4   :  { %308 = vrot.lane.b32.xlu0 %v297_v33, %s3692_s23  ;;  %v300_v36 = vadd.f32 %v297_v33, %v214_v35 }
  0xe6   :  { %v2906_v37 = vmul.f32 -1.442695, %v300_v36  ;;  %v495_v9 = vpop.f32.mrb[4].mxu0 }
  0xe7   :  { %v496_v10 = vadd.f32 %v3945_v7, %v495_v9  ;;  %v3165_v11 = vpop.f32.mrb[5].mxu0 }
  0xe8   :  { %3577 = vpow2.f32 %v2906_v37 }
  0xf2   :  { %v3578_v38 = vpop.eup %3577 }
  0xf3   :  { %v304_v39 = vadd.f32 1.0, %v3578_v38 }
  0xf5   :  { %3579 = vrcp.f32 %v304_v39 }
  0xff   :  { %v3580_v40 = vpop.eup %3579 }
 0x100   :  { %v318_v62 = vsub.f32 1.0, %v3580_v40 }
 0x156   :  { %v309_v41 = vpop.permute.xlu0 %308 }
 0x157   :  { %v311_v42 = vmul.f32 %v3580_v40, %v309_v41 }
 0x159   :  { %313 = vrot.lane.b32.xlu0 %v311_v42, %s3692_s23 }
 0x1cb   :  { %v314_v43 = vpop.permute.xlu0 %313 }
 0x1cc   :  { %v316_v44 = vadd.f32 %v314_v43, %v214_v35 }
 0x1ce   :  { %3581 = vtanh.f32 %v316_v44 }
 0x1d8   :  { %v3582_v57 = vpop.eup %3581 }
 0x1d9   :  { %320 = vrot.lane.b32.xlu1 %v3582_v57, %s3693_s24 }
 0x1dd   :  { %324 = vrot.lane.b32.xlu1 %v3836_v17, %s3694_s27 }
 0x24b   :  { %v321_v61 = vpop.permute.xlu1 %320 }
 0x24c   :  { %v323_v0 = vmul.f32 %v321_v61, %v318_v62 }
 0x24f   :  { %v325_v63 = vpop.permute.xlu1 %324 }
 0x250   :  { %v327_v1 = vmul.f32 %v3580_v40, %v325_v63 }
 0x252   :  { %v3934_v2 = vadd.f32 %v327_v1, %v323_v0 }
 0x254   :  { %341 = vrot.lane.b32.xlu0 %v3934_v2, %s3693_s24 }
 0x258   :  { %507 = vrot.lane.b32.xlu0 %v496_v10, %s3692_s23 }
 0x2c6   :  { %v342_v12 = vpop.permute.xlu0 %341 }
 0x2c7   :  { %3153 = vmatmul.mubr.msk.f32.vlgmr.msra.gmra.mrb[6].mxu1 %vm49_vm2, %v342_v12 }
 0x2c8   :  { %3437 = vmatpush3.bf16.msra.mxu1 %v3795_v8  ;;  %3174 = vmatprep.mubr.msk.f32.mxu1 %vm3690_vm3, %v3691_v16 }
 0x2c9   :  { %3438 = vmatprep.subr.bf16.mxu1 %v3689_v13 }
 0x2ca   :  { %v508_v27 = vpop.permute.xlu0 %507 }
 0x2cc   :  { %3440 = vmatpush3.bf16.msra.mxu1 %v3825_v15 }
 0x2cd   :  { %3447 = vmatprep.subr.bf16.mxu1 %v3689_v13 }
 0x2cf   :  { %3175 = vmatmul.mubr.msk.f32.vlgmr.msra.gmra.mrb[8].mxu1 %vm49_vm2, %v342_v12 }
 0x2d0   :  { %3449 = vmatpush3.bf16.msra.mxu1 %v3884_v50  ;;  %3196 = vmatprep.mubr.msk.f32.mxu1 %vm3690_vm3, %v3691_v16 }
 0x2d1   :  { %3450 = vmatprep.subr.bf16.mxu1 %v3689_v13 }
 0x2d4   :  { %3452 = vmatpush3.bf16.msra.mxu1 %v3907_v58 }
 0x2d5   :  { %3459 = vmatprep.subr.bf16.mxu1 %v3689_v13 }
 0x39a   :  { %v411_v17 = vpop.f32.mrb[6].mxu1 }
 0x39b   :  { %v412_v18 = vadd.f32 %v3966_v14, %v411_v17  ;;  %v3154_v19 = vpop.f32.mrb[7].mxu1 }
 0x39d   :  { %v499_v20 = vadd.f32 %v496_v10, %v412_v18  ;;  %v844_v10 = vld [vmem:[#allocation2 + $0x10] sm:$0xff] }
 0x39f   :  { %v2911_v21 = vmul.f32 -1.442695, %v499_v20 }
 0x3a1   :  { %3583 = vpow2.f32 %v2911_v21 }
 0x3a2   :  { %v612_v22 = vpop.f32.mrb[8].mxu1 }
 0x3a3   :  { %v613_v23 = vadd.f32 %v3862_v31, %v612_v22  ;;  %v3176_v24 = vpop.f32.mrb[9].mxu1 }
 0x3a5   :  { %624 = vrot.lane.b32.xlu1 %v613_v23, %s3692_s23  ;;  %v616_v32 = vadd.f32 %v613_v23, %v534_v30 }
 0x3a7   :  { %v2914_v33 = vmul.f32 -1.442695, %v616_v32 }
 0x3ab   :  { %v3584_v25 = vpop.eup %3583 }
 0x3ac   :  { %v503_v26 = vadd.f32 1.0, %v3584_v25 }
 0x3ae   :  { %3585 = vrcp.f32 %v503_v26 }
 0x3af   :  { %3587 = vpow2.f32 %v2914_v33 }
 0x3b8   :  { %v3586_v28 = vpop.eup %3585 }
 0x3b9   :  { %v510_v29 = vmul.f32 %v3586_v28, %v508_v27  ;;  %v3588_v34 = vpop.eup %3587  ;;  %v517_v51 = vsub.f32 1.0, %v3586_v28 }
 0x3ba   :  { %v620_v35 = vadd.f32 1.0, %v3588_v34 }
 0x3bb   :  { %512 = vrot.lane.b32.xlu0 %v510_v29, %s3692_s23 }
 0x3bc   :  { %3589 = vrcp.f32 %v620_v35 }
 0x3c6   :  { %v3590_v36 = vpop.eup %3589 }
 0x3c7   :  { %v634_v45 = vsub.f32 1.0, %v3590_v36  ;;  %v640_v47 = vmul.f32 %v3590_v36, %v3934_v2 }
 0x417   :  { %v625_v37 = vpop.permute.xlu1 %624 }
 0x418   :  { %v627_v38 = vmul.f32 %v3590_v36, %v625_v37 }
 0x41a   :  { %629 = vrot.lane.b32.xlu1 %v627_v38, %s3692_s23 }
 0x42d   :  { %v513_v39 = vpop.permute.xlu0 %512 }
 0x42e   :  { %v515_v40 = vadd.f32 %v513_v39, %v412_v18 }
 0x430   :  { %3591 = vtanh.f32 %v515_v40 }
 0x43a   :  { %v3592_v41 = vpop.eup %3591 }
 0x43b   :  { %519 = vrot.lane.b32.xlu0 %v3592_v41, %s3693_s24 }
 0x48c   :  { %v630_v42 = vpop.permute.xlu1 %629 }
 0x48d   :  { %v632_v43 = vadd.f32 %v630_v42, %v534_v30 }
 0x48f   :  { %3593 = vtanh.f32 %v632_v43 }
 0x499   :  { %v3594_v44 = vpop.eup %3593 }
 0x49a   :  { %636 = vrot.lane.b32.xlu1 %v3594_v44, %s3693_s24 }
 0x49e   :  { %523 = vrot.lane.b32.xlu1 %v3919_v60, %s3694_s27 }
 0x4ad   :  { %v520_v49 = vpop.permute.xlu0 %519 }
 0x4ae   :  { %v522_v55 = vmul.f32 %v520_v49, %v517_v51 }
 0x50c   :  { %v637_v46 = vpop.permute.xlu1 %636 }
 0x50d   :  { %v639_v48 = vmul.f32 %v637_v46, %v634_v45 }
 0x50f   :  { %v3978_v52 = vadd.f32 %v640_v47, %v639_v48 }
 0x510   :  { %v524_v53 = vpop.permute.xlu1 %523 }
 0x511   :  { %v526_v56 = vmul.f32 %v3586_v28, %v524_v53  ;;  %654 = vrot.lane.b32.xlu0 %v3978_v52, %s3693_s24 }
 0x513   :  { %v3982_v57 = vadd.f32 %v526_v56, %v522_v55 }
 0x515   :  { %529 = vrot.lane.b32.xlu1 %v3982_v57, %s3693_s24 }
 0x583   :  { %v655_v60 = vpop.permute.xlu0 %654 }
 0x584   :  { %3186 = vmatmul.mubr.msk.f32.vlgmr.msra.gmra.mrb[6].mxu0 %vm49_vm2, %v655_v60 }
 0x585   :  { %3455 = vmatpush3.bf16.msra.mxu0 %v3795_v8  ;;  %3207 = vmatprep.mubr.msk.f32.mxu0 %vm3690_vm3, %v3691_v16 }
 0x586   :  { %3456 = vmatprep.subr.bf16.mxu0 %v3689_v13 }
 0x587   :  { %v530_v61 = vpop.permute.xlu1 %529 }
 0x588   :  { %532 = vst.msk [vmem:[#allocation3] sm:$0xff] %vm49_vm2, %v530_v61  ;;  %3197 = vmatmul.mubr.msk.f32.vlgmr.msra.gmra.mrb[10].mxu1 %vm49_vm2, %v530_v61 }
 0x589   :  { %3458 = vmatpush3.bf16.msra.mxu0 %v3825_v15  ;;  %3461 = vmatpush3.bf16.msra.mxu1 %v3898_v54 }
 0x58a   :  { %3465 = vmatprep.subr.bf16.mxu0 %v3689_v13  ;;  %3462 = vmatprep.subr.bf16.mxu1 %v3689_v13 }
 0x58b   :  { %3218 = vmatprep.mubr.msk.f32.mxu1 %vm3690_vm3, %v3691_v16 }
 0x58c   :  { %3208 = vmatmul.mubr.msk.f32.vlgmr.msra.gmra.mrb[8].mxu0 %vm49_vm2, %v655_v60 }
 0x58d   :  { %3467 = vmatpush3.bf16.msra.mxu0 %v3884_v50  ;;  %3464 = vmatpush3.bf16.msra.mxu1 %v3912_v59 }
 0x58e   :  { %3468 = vmatprep.subr.bf16.mxu0 %v3689_v13  ;;  %3229 = vmatprep.mubr.msk.f32.mxu0 %vm3690_vm3, %v3691_v16 }
 0x58f   :  { %3471 = vmatprep.subr.bf16.mxu1 %v3689_v13 }
 0x591   :  { %3470 = vmatpush3.bf16.msra.mxu0 %v3907_v58 }
 0x592   :  { %3477 = vmatprep.subr.bf16.mxu0 %v3689_v13 }
 0x657   :  { %v724_v62 = vpop.f32.mrb[6].mxu0 }
 0x658   :  { %v3187_v63 = vpop.f32.mrb[7].mxu0  ;;  %v725_v6 = vadd.f32 %v3966_v14, %v724_v62  ;;  %v1154_v62 = vld [vmem:[#allocation2 + $0x18] sm:$0xff] }
 0x65b   :  { %v807_v0 = vpop.f32.mrb[10].mxu1 }
 0x65c   :  { %v808_v1 = vadd.f32 %v3945_v7, %v807_v0  ;;  %v3198_v2 = vpop.f32.mrb[11].mxu1 }
 0x65e   :  { %819 = vrot.lane.b32.xlu1 %v808_v1, %s3692_s23  ;;  %v811_v9 = vadd.f32 %v808_v1, %v725_v6 }
 0x65f   :  { %v922_v3 = vpop.f32.mrb[8].mxu0 }
 0x660   :  { %v923_v4 = vadd.f32 %v3862_v31, %v922_v3  ;;  %v3209_v5 = vpop.f32.mrb[9].mxu0  ;;  %v2919_v11 = vmul.f32 -1.442695, %v811_v9 }
 0x662   :  { %934 = vrot.lane.b32.xlu0 %v923_v4, %s3692_s23  ;;  %v926_v12 = vadd.f32 %v923_v4, %v844_v10  ;;  %3595 = vpow2.f32 %v2919_v11 }
 0x664   :  { %v2922_v17 = vmul.f32 -1.442695, %v926_v12 }
 0x666   :  { %3597 = vpow2.f32 %v2922_v17 }
 0x66c   :  { %v3596_v18 = vpop.eup %3595 }
 0x66d   :  { %v815_v19 = vadd.f32 1.0, %v3596_v18 }
 0x66f   :  { %3599 = vrcp.f32 %v815_v19 }
 0x670   :  { %v3598_v20 = vpop.eup %3597 }
 0x671   :  { %v930_v21 = vadd.f32 1.0, %v3598_v20 }
 0x673   :  { %3601 = vrcp.f32 %v930_v21 }
 0x679   :  { %v3600_v22 = vpop.eup %3599 }
 0x67a   :  { %v829_v35 = vsub.f32 1.0, %v3600_v22  ;;  %v835_v37 = vmul.f32 %v3600_v22, %v3982_v57 }
 0x67d   :  { %v3602_v25 = vpop.eup %3601 }
 0x67e   :  { %v944_v40 = vsub.f32 1.0, %v3602_v25  ;;  %v950_v42 = vmul.f32 %v3602_v25, %v3978_v52 }
 0x6d0   :  { %v820_v23 = vpop.permute.xlu1 %819 }
 0x6d1   :  { %v822_v24 = vmul.f32 %v3600_v22, %v820_v23 }
 0x6d3   :  { %824 = vrot.lane.b32.xlu1 %v822_v24, %s3692_s23 }
 0x6d4   :  { %v935_v26 = vpop.permute.xlu0 %934 }
 0x6d5   :  { %v937_v27 = vmul.f32 %v3602_v25, %v935_v26 }
 0x6d7   :  { %939 = vrot.lane.b32.xlu0 %v937_v27, %s3692_s23 }
 0x745   :  { %v825_v28 = vpop.permute.xlu1 %824 }
 0x746   :  { %v827_v29 = vadd.f32 %v825_v28, %v725_v6 }
 0x748   :  { %3603 = vtanh.f32 %v827_v29 }
 0x749   :  { %v940_v30 = vpop.permute.xlu0 %939 }
 0x74a   :  { %v942_v32 = vadd.f32 %v940_v30, %v844_v10 }
 0x74c   :  { %3605 = vtanh.f32 %v942_v32 }
 0x752   :  { %v3604_v33 = vpop.eup %3603 }
 0x753   :  { %831 = vrot.lane.b32.xlu1 %v3604_v33, %s3693_s24 }
 0x756   :  { %v3606_v34 = vpop.eup %3605 }
 0x757   :  { %946 = vrot.lane.b32.xlu0 %v3606_v34, %s3693_s24 }
 0x7c5   :  { %v832_v36 = vpop.permute.xlu1 %831 }
 0x7c6   :  { %v834_v38 = vmul.f32 %v832_v36, %v829_v35 }
 0x7c8   :  { %v4018_v39 = vadd.f32 %v835_v37, %v834_v38 }
 0x7c9   :  { %v947_v41 = vpop.permute.xlu0 %946 }
 0x7ca   :  { %v949_v43 = vmul.f32 %v947_v41, %v944_v40  ;;  %838 = vrot.lane.b32.xlu1 %v4018_v39, %s3693_s24 }
 0x7cc   :  { %v4023_v44 = vadd.f32 %v950_v42, %v949_v43 }
 0x7ce   :  { %964 = vrot.lane.b32.xlu0 %v4023_v44, %s3693_s24 }
 0x83c   :  { %v839_v45 = vpop.permute.xlu1 %838 }
 0x83d   :  { %842 = vst.msk [vmem:[#allocation3 + $0x8] sm:$0xff] %vm49_vm2, %v839_v45  ;;  %3230 = vmatmul.mubr.msk.f32.vlgmr.msra.gmra.mrb[10].mxu0 %vm49_vm2, %v839_v45 }
 0x83e   :  { %3479 = vmatpush3.bf16.msra.mxu0 %v3898_v54  ;;  %3251 = vmatprep.mubr.msk.f32.mxu0 %vm3690_vm3, %v3691_v16 }
 0x83f   :  { %3480 = vmatprep.subr.bf16.mxu0 %v3689_v13 }
 0x840   :  { %v965_v46 = vpop.permute.xlu0 %964 }
 0x841   :  { %3219 = vmatmul.mubr.msk.f32.vlgmr.msra.gmra.mrb[12].mxu1 %vm49_vm2, %v965_v46 }
 0x842   :  { %3473 = vmatpush3.bf16.msra.mxu1 %v3795_v8  ;;  %3240 = vmatprep.mubr.msk.f32.mxu1 %vm3690_vm3, %v3691_v16 }
 0x843   :  { %3474 = vmatprep.subr.bf16.mxu1 %v3689_v13  ;;  %3482 = vmatpush3.bf16.msra.mxu0 %v3912_v59 }
 0x844   :  { %3489 = vmatprep.subr.bf16.mxu0 %v3689_v13 }
 0x846   :  { %3476 = vmatpush3.bf16.msra.mxu1 %v3825_v15 }
 0x847   :  { %3483 = vmatprep.subr.bf16.mxu1 %v3689_v13 }
 0x849   :  { %3241 = vmatmul.mubr.msk.f32.vlgmr.msra.gmra.mrb[14].mxu1 %vm49_vm2, %v965_v46 }
 0x84a   :  { %3485 = vmatpush3.bf16.msra.mxu1 %v3884_v50  ;;  %3262 = vmatprep.mubr.msk.f32.mxu1 %vm3690_vm3, %v3691_v16 }
 0x84b   :  { %3486 = vmatprep.subr.bf16.mxu1 %v3689_v13 }
 0x84e   :  { %3488 = vmatpush3.bf16.msra.mxu1 %v3907_v58 }
 0x84f   :  { %3495 = vmatprep.subr.bf16.mxu1 %v3689_v13 }
 0x910   :  { %v1117_v47 = vpop.f32.mrb[10].mxu0 }
 0x911   :  { %v1118_v48 = vadd.f32 %v3945_v7, %v1117_v47  ;;  %v3231_v49 = vpop.f32.mrb[11].mxu0 }
 0x913   :  { %1129 = vrot.lane.b32.xlu0 %v1118_v48, %s3692_s23 }
 0x914   :  { %v1034_v51 = vpop.f32.mrb[12].mxu1 }
 0x915   :  { %v3220_v52 = vpop.f32.mrb[13].mxu1  ;;  %v1035_v57 = vadd.f32 %v3966_v14, %v1034_v51 }
 0x917   :  { %v1121_v60 = vadd.f32 %v1118_v48, %v1035_v57  ;;  %v1464_v48 = vld [vmem:[#allocation2 + $0x20] sm:$0xff] }
 0x919   :  { %v2927_v61 = vmul.f32 -1.442695, %v1121_v60 }
 0x91b   :  { %3607 = vpow2.f32 %v2927_v61 }
 0x91c   :  { %v1232_v53 = vpop.f32.mrb[14].mxu1 }
 0x91d   :  { %v1233_v55 = vadd.f32 %v3862_v31, %v1232_v53  ;;  %v3242_v56 = vpop.f32.mrb[15].mxu1 }
 0x91f   :  { %1244 = vrot.lane.b32.xlu1 %v1233_v55, %s3692_s23  ;;  %v1236_v63 = vadd.f32 %v1233_v55, %v1154_v62 }
 0x921   :  { %v2930_v0 = vmul.f32 -1.442695, %v1236_v63 }
 0x923   :  { %3609 = vpow2.f32 %v2930_v0 }
 0x925   :  { %v3608_v1 = vpop.eup %3607 }
 0x926   :  { %v1125_v2 = vadd.f32 1.0, %v3608_v1 }
 0x928   :  { %3611 = vrcp.f32 %v1125_v2 }
 0x92d   :  { %v3610_v3 = vpop.eup %3609 }
 0x92e   :  { %v1240_v4 = vadd.f32 1.0, %v3610_v3 }
 0x930   :  { %3613 = vrcp.f32 %v1240_v4 }
 0x932   :  { %v3612_v5 = vpop.eup %3611 }
 0x933   :  { %v1139_v23 = vsub.f32 1.0, %v3612_v5  ;;  %v1145_v25 = vmul.f32 %v3612_v5, %v4018_v39 }
 0x93a   :  { %v3614_v10 = vpop.eup %3613 }
 0x93b   :  { %v1254_v28 = vsub.f32 1.0, %v3614_v10  ;;  %v1260_v30 = vmul.f32 %v3614_v10, %v4023_v44 }
 0x985   :  { %v1130_v6 = vpop.permute.xlu0 %1129 }
 0x986   :  { %v1132_v9 = vmul.f32 %v3612_v5, %v1130_v6 }
 0x988   :  { %1134 = vrot.lane.b32.xlu0 %v1132_v9, %s3692_s23 }
 0x991   :  { %v1245_v11 = vpop.permute.xlu1 %1244 }
 0x992   :  { %v1247_v12 = vmul.f32 %v3614_v10, %v1245_v11 }
 0x994   :  { %1249 = vrot.lane.b32.xlu1 %v1247_v12, %s3692_s23 }
 0x9fa   :  { %v1135_v17 = vpop.permute.xlu0 %1134 }
 0x9fb   :  { %v1137_v18 = vadd.f32 %v1135_v17, %v1035_v57 }
 0x9fd   :  { %3615 = vtanh.f32 %v1137_v18 }
 0xa06   :  { %v1250_v19 = vpop.permute.xlu1 %1249 }
 0xa07   :  { %v3616_v20 = vpop.eup %3615  ;;  %v1252_v21 = vadd.f32 %v1250_v19, %v1154_v62 }
 0xa08   :  { %1141 = vrot.lane.b32.xlu0 %v3616_v20, %s3693_s24 }
 0xa09   :  { %3617 = vtanh.f32 %v1252_v21 }
 0xa13   :  { %v3618_v22 = vpop.eup %3617 }
 0xa14   :  { %1256 = vrot.lane.b32.xlu1 %v3618_v22, %s3693_s24 }
 0xa7a   :  { %v1142_v24 = vpop.permute.xlu0 %1141 }
 0xa7b   :  { %v1144_v26 = vmul.f32 %v1142_v24, %v1139_v23 }
 0xa7d   :  { %v4059_v27 = vadd.f32 %v1145_v25, %v1144_v26 }
 0xa7f   :  { %1148 = vrot.lane.b32.xlu0 %v4059_v27, %s3693_s24 }
 0xa86   :  { %v1257_v29 = vpop.permute.xlu1 %1256 }
 0xa87   :  { %v1259_v32 = vmul.f32 %v1257_v29, %v1254_v28 }
 0xa89   :  { %v4064_v33 = vadd.f32 %v1260_v30, %v1259_v32  ;;  %v1774_v32 = vld [vmem:[#allocation2 + $0x28] sm:$0xff] }
 0xa8b   :  { %1274 = vrot.lane.b32.xlu1 %v4064_v33, %s3693_s24 }
 0xaf1   :  { %v1149_v34 = vpop.permute.xlu0 %1148 }
 0xaf2   :  { %1152 = vst.msk [vmem:[#allocation3 + $0x10] sm:$0xff] %vm49_vm2, %v1149_v34  ;;  %3263 = vmatmul.mubr.msk.f32.vlgmr.msra.gmra.mrb[16].mxu1 %vm49_vm2, %v1149_v34 }
 0xaf3   :  { %3497 = vmatpush3.bf16.msra.mxu1 %v3898_v54  ;;  %3284 = vmatprep.mubr.msk.f32.mxu1 %vm3690_vm3, %v3691_v16 }
 0xaf4   :  { %3498 = vmatprep.subr.bf16.mxu1 %v3689_v13 }
 0xaf7   :  { %3500 = vmatpush3.bf16.msra.mxu1 %v3912_v59 }
 0xaf8   :  { %3507 = vmatprep.subr.bf16.mxu1 %v3689_v13 }
 0xafd   :  { %v1275_v35 = vpop.permute.xlu1 %1274 }
 0xafe   :  { %3252 = vmatmul.mubr.msk.f32.vlgmr.msra.gmra.mrb[12].mxu0 %vm49_vm2, %v1275_v35 }
 0xaff   :  { %3491 = vmatpush3.bf16.msra.mxu0 %v3795_v8  ;;  %3273 = vmatprep.mubr.msk.f32.mxu0 %vm3690_vm3, %v3691_v16 }
 0xb00   :  { %3492 = vmatprep.subr.bf16.mxu0 %v3689_v13 }
 0xb03   :  { %3494 = vmatpush3.bf16.msra.mxu0 %v3825_v15 }
 0xb04   :  { %3501 = vmatprep.subr.bf16.mxu0 %v3689_v13 }
 0xb06   :  { %3274 = vmatmul.mubr.msk.f32.vlgmr.msra.gmra.mrb[14].mxu0 %vm49_vm2, %v1275_v35 }
 0xb07   :  { %3503 = vmatpush3.bf16.msra.mxu0 %v3884_v50  ;;  %3295 = vmatprep.mubr.msk.f32.mxu0 %vm3690_vm3, %v3691_v16 }
 0xb08   :  { %3504 = vmatprep.subr.bf16.mxu0 %v3689_v13 }
 0xb0b   :  { %3506 = vmatpush3.bf16.msra.mxu0 %v3907_v58 }
 0xb0c   :  { %3513 = vmatprep.subr.bf16.mxu0 %v3689_v13 }
 0xbc5   :  { %v1427_v36 = vpop.f32.mrb[16].mxu1 }
 0xbc6   :  { %v1428_v37 = vadd.f32 %v3945_v7, %v1427_v36  ;;  %v3264_v38 = vpop.f32.mrb[17].mxu1 }
 0xbc8   :  { %1439 = vrot.lane.b32.xlu0 %v1428_v37, %s3692_s23 }
 0xbd1   :  { %v1344_v39 = vpop.f32.mrb[12].mxu0 }
 0xbd2   :  { %v3253_v40 = vpop.f32.mrb[13].mxu0  ;;  %v1345_v44 = vadd.f32 %v3966_v14, %v1344_v39 }
 0xbd4   :  { %v1431_v45 = vadd.f32 %v1428_v37, %v1345_v44 }
 0xbd6   :  { %v2935_v46 = vmul.f32 -1.442695, %v1431_v45 }
 0xbd8   :  { %3619 = vpow2.f32 %v2935_v46 }
 0xbd9   :  { %v1542_v41 = vpop.f32.mrb[14].mxu0 }
 0xbda   :  { %v1543_v42 = vadd.f32 %v3862_v31, %v1542_v41  ;;  %v3275_v43 = vpop.f32.mrb[15].mxu0 }
 0xbdc   :  { %1554 = vrot.lane.b32.xlu1 %v1543_v42, %s3692_s23  ;;  %v1546_v49 = vadd.f32 %v1543_v42, %v1464_v48 }
 0xbde   :  { %v2938_v52 = vmul.f32 -1.442695, %v1546_v49 }
 0xbe2   :  { %v3620_v47 = vpop.eup %3619 }
 0xbe3   :  { %v1435_v51 = vadd.f32 1.0, %v3620_v47 }
 0xbe5   :  { %3621 = vrcp.f32 %v1435_v51 }
 0xbe6   :  { %3623 = vpow2.f32 %v2938_v52 }
 0xbef   :  { %v3622_v53 = vpop.eup %3621 }
 0xbf0   :  { %v3624_v57 = vpop.eup %3623  ;;  %v1449_v6 = vsub.f32 1.0, %v3622_v53  ;;  %v1455_v10 = vmul.f32 %v3622_v53, %v4059_v27 }
 0xbf1   :  { %v1550_v60 = vadd.f32 1.0, %v3624_v57 }
 0xbf3   :  { %3625 = vrcp.f32 %v1550_v60 }
 0xbfd   :  { %v3626_v61 = vpop.eup %3625 }
 0xbfe   :  { %v1564_v17 = vsub.f32 1.0, %v3626_v61  ;;  %v1570_v19 = vmul.f32 %v3626_v61, %v4064_v33 }
 0xc3a   :  { %v1440_v55 = vpop.permute.xlu0 %1439 }
 0xc3b   :  { %v1442_v56 = vmul.f32 %v3622_v53, %v1440_v55 }
 0xc3d   :  { %1444 = vrot.lane.b32.xlu0 %v1442_v56, %s3692_s23 }
 0xc4e   :  { %v1555_v62 = vpop.permute.xlu1 %1554 }
 0xc4f   :  { %v1557_v63 = vmul.f32 %v3626_v61, %v1555_v62 }
 0xc51   :  { %1559 = vrot.lane.b32.xlu1 %v1557_v63, %s3692_s23  ;;  %v2085_v63 = vld [vmem:[%s4372_s2] sm:$0xff] }
 0xcaf   :  { %v1445_v0 = vpop.permute.xlu0 %1444 }
 0xcb0   :  { %v1447_v1 = vadd.f32 %v1445_v0, %v1345_v44  ;;  %v2086_v0 = vld [vmem:[%s4372_s2 + $0x8] sm:$0xff] }
 0xcb2   :  { %3627 = vtanh.f32 %v1447_v1  ;;  %v4160_v1 = vpack.c.bf16 %v2086_v0, %v2085_v63 }
 0xcbc   :  { %v3628_v2 = vpop.eup %3627 }
 0xcbd   :  { %1451 = vrot.lane.b32.xlu0 %v3628_v2, %s3693_s24  ;;  %v2087_v2 = vld [vmem:[%s4372_s2 + $0x10] sm:$0xff] }
 0xcc3   :  { %v1560_v3 = vpop.permute.xlu1 %1559 }
 0xcc4   :  { %v1562_v4 = vadd.f32 %v1560_v3, %v1464_v48  ;;  %v2088_v3 = vld [vmem:[%s4372_s2 + $0x18] sm:$0xff] }
 0xcc6   :  { %3629 = vtanh.f32 %v1562_v4 }
 0xcd0   :  { %v3630_v5 = vpop.eup %3629 }
 0xcd1   :  { %1566 = vrot.lane.b32.xlu1 %v3630_v5, %s3693_s24  ;;  %v4170_v5 = vpack.c.bf16 %v2088_v3, %v2087_v2 }
 0xd2f   :  { %v1452_v9 = vpop.permute.xlu0 %1451 }
 0xd30   :  { %v1454_v11 = vmul.f32 %v1452_v9, %v1449_v6 }
 0xd32   :  { %v4100_v12 = vadd.f32 %v1455_v10, %v1454_v11 }
 0xd34   :  { %1458 = vrot.lane.b32.xlu0 %v4100_v12, %s3693_s24 }
 0xd43   :  { %v1567_v18 = vpop.permute.xlu1 %1566 }
 0xd44   :  { %v1569_v20 = vmul.f32 %v1567_v18, %v1564_v17  ;;  %v4185_v17 = vld [vmem:[%s4376_s4] ss:$0 sm:$0xff] }
 0xd46   :  { %v4105_v21 = vadd.f32 %v1570_v19, %v1569_v20 }
 0xd48   :  { %1584 = vrot.lane.b32.xlu1 %v4105_v21, %s3693_s24 }
 0xda6   :  { %v1459_v22 = vpop.permute.xlu0 %1458 }
 0xda7   :  { %1462 = vst.msk [vmem:[#allocation3 + $0x18] sm:$0xff] %vm49_vm2, %v1459_v22  ;;  %3296 = vmatmul.mubr.msk.f32.vlgmr.msra.gmra.mrb[16].mxu0 %vm49_vm2, %v1459_v22 }
 0xda8   :  { %3515 = vmatpush3.bf16.msra.mxu0 %v3898_v54  ;;  %3317 = vmatprep.mubr.msk.f32.mxu0 %vm3690_vm3, %v3691_v16 }
 0xda9   :  { %3516 = vmatprep.subr.bf16.mxu0 %v3689_v13 }
 0xdac   :  { %3518 = vmatpush3.bf16.msra.mxu0 %v3912_v59 }
 0xdad   :  { %3525 = vmatprep.subr.bf16.mxu0 %v3689_v13 }
 0xdba   :  { %v1585_v23 = vpop.permute.xlu1 %1584 }
 0xdbb   :  { %3285 = vmatmul.mubr.msk.f32.vlgmr.msra.gmra.mrb[18].mxu1 %vm49_vm2, %v1585_v23 }
 0xdbc   :  { %3509 = vmatpush3.bf16.msra.mxu1 %v3795_v8  ;;  %3306 = vmatprep.mubr.msk.f32.mxu1 %vm3690_vm3, %v3691_v16 }
 0xdbd   :  { %3510 = vmatprep.subr.bf16.mxu1 %v3689_v13 }
 0xdc0   :  { %3512 = vmatpush3.bf16.msra.mxu1 %v3825_v15 }
 0xdc1   :  { %3519 = vmatprep.subr.bf16.mxu1 %v3689_v13 }
 0xdc3   :  { %3307 = vmatmul.mubr.msk.f32.vlgmr.msra.gmra.mrb[20].mxu1 %vm49_vm2, %v1585_v23 }
 0xdc4   :  { %3521 = vmatpush3.bf16.msra.mxu1 %v3884_v50  ;;  %3328 = vmatprep.mubr.msk.f32.mxu1 %vm3690_vm3, %v3691_v16 }
 0xdc5   :  { %3522 = vmatprep.subr.bf16.mxu1 %v3689_v13 }
 0xdc8   :  { %3524 = vmatpush3.bf16.msra.mxu1 %v3907_v58 }
 0xdc9   :  { %3531 = vmatprep.subr.bf16.mxu1 %v3689_v13 }
 0xe7a   :  { %v1737_v8 = vpop.f32.mrb[16].mxu0 }
 0xe7b   :  { %v1738_v54 = vadd.f32 %v3945_v7, %v1737_v8  ;;  %v3297_v59 = vpop.f32.mrb[17].mxu0 }
 0xe7c   :  { %v2084_v59 = vld [vmem:[#allocation2 + $0x30] sm:$0xff] }
 0xe7d   :  { %1749 = vrot.lane.b32.xlu0 %v1738_v54, %s3692_s23 }
 0xe8e   :  { %v1654_v15 = vpop.f32.mrb[18].mxu1 }
 0xe8f   :  { %v3286_v24 = vpop.f32.mrb[19].mxu1  ;;  %v1655_v27 = vadd.f32 %v3966_v14, %v1654_v15 }
 0xe91   :  { %v1741_v28 = vadd.f32 %v1738_v54, %v1655_v27 }
 0xe93   :  { %v2943_v58 = vmul.f32 -1.442695, %v1741_v28 }
 0xe95   :  { %3631 = vpow2.f32 %v2943_v58 }
 0xe96   :  { %v1852_v25 = vpop.f32.mrb[20].mxu1 }
 0xe97   :  { %v1853_v50 = vadd.f32 %v3862_v31, %v1852_v25  ;;  %v3308_v26 = vpop.f32.mrb[21].mxu1 }
 0xe99   :  { %1864 = vrot.lane.b32.xlu1 %v1853_v50, %s3692_s23  ;;  %v1856_v33 = vadd.f32 %v1853_v50, %v1774_v32 }
 0xe9b   :  { %v2946_v34 = vmul.f32 -1.442695, %v1856_v33 }
 0xe9f   :  { %v3632_v29 = vpop.eup %3631 }
 0xea0   :  { %v1745_v30 = vadd.f32 1.0, %v3632_v29 }
 0xea2   :  { %3633 = vrcp.f32 %v1745_v30 }
 0xea3   :  { %3635 = vpow2.f32 %v2946_v34 }
 0xeac   :  { %v3634_v35 = vpop.eup %3633 }
 0xead   :  { %v3636_v31 = vpop.eup %3635  ;;  %v1759_v48 = vsub.f32 1.0, %v3634_v35  ;;  %v1765_v51 = vmul.f32 %v3634_v35, %v4100_v12 }
 0xeae   :  { %v1860_v38 = vadd.f32 1.0, %v3636_v31 }
 0xeb0   :  { %3637 = vrcp.f32 %v1860_v38  ;;  %v2281_v38 = vld [vmem:[%s4377_s6 + $0x18] sm:$0xff] }
 0xeba   :  { %v3638_v39 = vpop.eup %3637 }
 0xebb   :  { %v1874_v55 = vsub.f32 1.0, %v3638_v39  ;;  %v1880_v57 = vmul.f32 %v3638_v39, %v4105_v21 }
 0xeef   :  { %v1750_v36 = vpop.permute.xlu0 %1749 }
 0xef0   :  { %v1752_v37 = vmul.f32 %v3634_v35, %v1750_v36  ;;  %v2278_v35 = vld [vmem:[%s4377_s6] sm:$0xff]  ;;  %v2279_v36 = vld [vmem:[%s4377_s6 + $0x8] sm:$0xff] }
 0xef1   :  { %v3538_v31 = vpack.c.bf16 %v2279_v36, %v2278_v35 }
 0xef2   :  { %1754 = vrot.lane.b32.xlu0 %v1752_v37, %s3692_s23  ;;  %v2280_v37 = vld [vmem:[%s4377_s6 + $0x10] sm:$0xff] }
 0xf0b   :  { %v1865_v40 = vpop.permute.xlu1 %1864 }
 0xf0c   :  { %v1867_v41 = vmul.f32 %v3638_v39, %v1865_v40  ;;  %v3541_v39 = vpack.c.bf16 %v2281_v38, %v2280_v37 }
 0xf0e   :  { %1869 = vrot.lane.b32.xlu1 %v1867_v41, %s3692_s23  ;;  %v2192_v41 = vld [vmem:[%s4378_s5] sm:$0xff] }
 0xf64   :  { %v1755_v42 = vpop.permute.xlu0 %1754 }
 0xf65   :  { %v1757_v43 = vadd.f32 %v1755_v42, %v1655_v27  ;;  %v2193_v42 = vld [vmem:[%s4378_s5 + $0x8] sm:$0xff] }
 0xf67   :  { %3639 = vtanh.f32 %v1757_v43  ;;  %v2194_v43 = vld [vmem:[%s4378_s5 + $0x10] sm:$0xff] }
 0xf71   :  { %v3640_v44 = vpop.eup %3639 }
 0xf72   :  { %1761 = vrot.lane.b32.xlu0 %v3640_v44, %s3693_s24  ;;  %v3532_v44 = vpack.c.bf16 %v2193_v42, %v2192_v41  ;;  %v2716_v41 = vld [vmem:[%s4381_s10 + $0x10] sm:$0xff]  ;;  %v2717_v42 = vld [vmem:[%s4381_s10 + $0x18] sm:$0xff] }
 0xf80   :  { %v1870_v45 = vpop.permute.xlu1 %1869 }
 0xf81   :  { %v1872_v46 = vadd.f32 %v1870_v45, %v1774_v32  ;;  %v2195_v45 = vld [vmem:[%s4378_s5 + $0x18] sm:$0xff] }
 0xf83   :  { %3641 = vtanh.f32 %v1872_v46  ;;  %v3535_v46 = vpack.c.bf16 %v2195_v45, %v2194_v43  ;;  %v3565_v43 = vpack.c.bf16 %v2717_v42, %v2716_v41  ;;  %v2706_v45 = vld [vmem:[#allocation3] sm:$0xff] }
 0xf8d   :  { %v3642_v47 = vpop.eup %3641 }
 0xf8e   :  { %1876 = vrot.lane.b32.xlu1 %v3642_v47, %s3693_s24 }
 0xfe4   :  { %v1762_v49 = vpop.permute.xlu0 %1761 }
 0xfe5   :  { %v1764_v52 = vmul.f32 %v1762_v49, %v1759_v48 }
 0xfe7   :  { %v4141_v53 = vadd.f32 %v1765_v51, %v1764_v52 }
 0xfe9   :  { %1768 = vrot.lane.b32.xlu0 %v4141_v53, %s3693_s24 }
0x1000   :  { %v1877_v56 = vpop.permute.xlu1 %1876 }
0x1001   :  { %v1879_v60 = vmul.f32 %v1877_v56, %v1874_v55 }
0x1003   :  { %v4146_v61 = vadd.f32 %v1880_v57, %v1879_v60 }
0x1005   :  { %1894 = vrot.lane.b32.xlu1 %v4146_v61, %s3693_s24 }
0x105b   :  { %v1769_v62 = vpop.permute.xlu0 %1768 }
0x105c   :  { %1772 = vst.msk [vmem:[#allocation3 + $0x20] sm:$0xff] %vm49_vm2, %v1769_v62  ;;  %3329 = vmatmul.mubr.msk.f32.vlgmr.msra.gmra.mrb[22].mxu1 %vm49_vm2, %v1769_v62 }
0x105d   :  { %3350 = vmatprep.mubr.msk.f32.mxu1 %vm3690_vm3, %v3691_v16  ;;  %3533 = vmatpush3.bf16.msra.mxu1 %v3532_v44 }
0x105e   :  { %3534 = vmatprep.subr.bf16.mxu1 %v3689_v13 }
0x1061   :  { %3536 = vmatpush3.bf16.msra.mxu1 %v3535_v46 }
0x1062   :  { %3543 = vmatprep.subr.bf16.mxu1 %v3689_v13 }
0x1077   :  { %v1895_v4 = vpop.permute.xlu1 %1894 }
0x1078   :  { %3318 = vmatmul.mubr.msk.f32.vlgmr.msra.gmra.mrb[18].mxu0 %vm49_vm2, %v1895_v4 }
0x1079   :  { %3527 = vmatpush3.bf16.msra.mxu0 %v4160_v1  ;;  %3339 = vmatprep.mubr.msk.f32.mxu0 %vm3690_vm3, %v3691_v16 }
0x107a   :  { %3528 = vmatprep.subr.bf16.mxu0 %v3689_v13 }
0x107d   :  { %3530 = vmatpush3.bf16.msra.mxu0 %v4170_v5 }
0x107e   :  { %3537 = vmatprep.subr.bf16.mxu0 %v3689_v13 }
0x1080   :  { %3340 = vmatmul.mubr.msk.f32.vlgmr.msra.gmra.mrb[20].mxu0 %vm49_vm2, %v1895_v4 }
0x1081   :  { %3361 = vmatprep.mubr.msk.f32.mxu0 %vm3690_vm3, %v3691_v16  ;;  %3539 = vmatpush3.bf16.msra.mxu0 %v3538_v31 }
0x1082   :  { %3540 = vmatprep.subr.bf16.mxu0 %v3689_v13 }
0x1085   :  { %3542 = vmatpush3.bf16.msra.mxu0 %v3541_v39 }
0x1086   :  { %3549 = vmatprep.subr.bf16.mxu0 %v3689_v13 }
0x112f   :  { %v2047_v6 = vpop.f32.mrb[22].mxu1 }
0x1130   :  { %v2048_v9 = vadd.f32 %v3945_v7, %v2047_v6  ;;  %v3330_v10 = vpop.f32.mrb[23].mxu1 }
0x1132   :  { %2059 = vrot.lane.b32.xlu0 %v2048_v9, %s3692_s23 }
0x114b   :  { %v1964_v11 = vpop.f32.mrb[18].mxu0 }
0x114c   :  { %v3319_v12 = vpop.f32.mrb[19].mxu0  ;;  %v1965_v21 = vadd.f32 %v3966_v14, %v1964_v11 }
0x114e   :  { %v2051_v22 = vadd.f32 %v2048_v9, %v1965_v21 }
0x1150   :  { %v2951_v7 = vmul.f32 -1.442695, %v2051_v22 }
0x1152   :  { %3643 = vpow2.f32 %v2951_v7 }
0x1153   :  { %v2162_v18 = vpop.f32.mrb[20].mxu0 }
0x1154   :  { %v2163_v19 = vadd.f32 %v4185_v17, %v2162_v18  ;;  %v3341_v20 = vpop.f32.mrb[21].mxu0 }
0x1156   :  { %2174 = vrot.lane.b32.xlu1 %v2163_v19, %s3692_s23  ;;  %v2166_v24 = vadd.f32 %v2163_v19, %v2084_v59 }
0x1158   :  { %v2954_v50 = vmul.f32 -1.442695, %v2166_v24 }
0x115c   :  { %v3644_v23 = vpop.eup %3643 }
0x115d   :  { %v2055_v8 = vadd.f32 1.0, %v3644_v23 }
0x115f   :  { %3645 = vrcp.f32 %v2055_v8 }
0x1160   :  { %3647 = vpow2.f32 %v2954_v50 }
0x1169   :  { %v3646_v54 = vpop.eup %3645 }
0x116a   :  { %v3648_v26 = vpop.eup %3647  ;;  %v2069_v47 = vsub.f32 1.0, %v3646_v54  ;;  %v2075_v49 = vmul.f32 %v3646_v54, %v4141_v53 }
0x116b   :  { %v2170_v27 = vadd.f32 1.0, %v3648_v26 }
0x116d   :  { %3649 = vrcp.f32 %v2170_v27 }
0x1177   :  { %v3650_v28 = vpop.eup %3649 }
0x1178   :  { %v2184_v55 = vsub.f32 1.0, %v3650_v28  ;;  %v2190_v57 = vmul.f32 %v3650_v28, %v4146_v61  ;;  %v4251_v61 = vld [vmem:[%s4379_s8] ss:$0 sm:$0xff] }
0x11a4   :  { %v2060_v15 = vpop.permute.xlu0 %2059 }
0x11a5   :  { %v2062_v25 = vmul.f32 %v3646_v54, %v2060_v15 }
0x11a7   :  { %2064 = vrot.lane.b32.xlu0 %v2062_v25, %s3692_s23 }
0x11c8   :  { %v2175_v14 = vpop.permute.xlu1 %2174 }
0x11c9   :  { %v2177_v58 = vmul.f32 %v3650_v28, %v2175_v14  ;;  %v2714_v14 = vld [vmem:[%s4381_s10] sm:$0xff] }
0x11cb   :  { %2179 = vrot.lane.b32.xlu1 %v2177_v58, %s3692_s23  ;;  %v2715_v58 = vld [vmem:[%s4381_s10 + $0x8] sm:$0xff] }
0x1219   :  { %v2065_v29 = vpop.permute.xlu0 %2064 }
0x121a   :  { %v2067_v30 = vadd.f32 %v2065_v29, %v1965_v21  ;;  %v3561_v29 = vpack.c.bf16 %v2715_v58, %v2714_v14 }
0x121c   :  { %3651 = vtanh.f32 %v2067_v30 }
0x1226   :  { %v3652_v32 = vpop.eup %3651 }
0x1227   :  { %2071 = vrot.lane.b32.xlu0 %v3652_v32, %s3693_s24 }
0x123d   :  { %v2180_v33 = vpop.permute.xlu1 %2179 }
0x123e   :  { %v2182_v34 = vadd.f32 %v2180_v33, %v2084_v59 }
0x1240   :  { %3653 = vtanh.f32 %v2182_v34 }
0x124a   :  { %v3654_v40 = vpop.eup %3653 }
0x124b   :  { %2186 = vrot.lane.b32.xlu1 %v3654_v40, %s3693_s24 }
0x1299   :  { %v2072_v48 = vpop.permute.xlu0 %2071 }
0x129a   :  { %v2074_v51 = vmul.f32 %v2072_v48, %v2069_v47  ;;  %v2708_v47 = vld [vmem:[#allocation3 + $0x10] sm:$0xff]  ;;  %v2709_v48 = vld [vmem:[#allocation3 + $0x18] sm:$0xff] }
0x129c   :  { %v4223_v52 = vadd.f32 %v2075_v49, %v2074_v51  ;;  %v2710_v49 = vld [vmem:[#allocation3 + $0x20] sm:$0xff] }
0x129e   :  { %2078 = vrot.lane.b32.xlu0 %v4223_v52, %s3693_s24 }
0x12bd   :  { %v2187_v56 = vpop.permute.xlu1 %2186 }
0x12be   :  { %v2189_v60 = vmul.f32 %v2187_v56, %v2184_v55 }
0x12c0   :  { %v4228_v62 = vadd.f32 %v2190_v57, %v2189_v60 }
0x12c2   :  { %2204 = vrot.lane.b32.xlu1 %v4228_v62, %s3693_s24 }
0x1310   :  { %v2079_v63 = vpop.permute.xlu0 %2078 }
0x1311   :  { %2082 = vst.msk [vmem:[#allocation3 + $0x28] sm:$0xff] %vm49_vm2, %v2079_v63  ;;  %3362 = vmatmul.mubr.msk.f32.vlgmr.msra.gmra.mrb[22].mxu0 %vm49_vm2, %v2079_v63  ;;  %v4305_v63 = vld [vmem:[%s4382_s11] ss:$0 sm:$0xff] }
0x1312   :  { %3551 = vmatpush3.bf16.msra.mxu0 %v3532_v44  ;;  %3383 = vmatprep.mubr.msk.f32.mxu0 %vm3690_vm3, %v3691_v16 }
0x1313   :  { %3552 = vmatprep.subr.bf16.mxu0 %v3689_v13 }
0x1316   :  { %3554 = vmatpush3.bf16.msra.mxu0 %v3535_v46  ;;  %v2707_v46 = vld [vmem:[#allocation3 + $0x8] sm:$0xff] }
0x1317   :  { %3562 = vmatprep.subr.bf16.mxu0 %v3561_v29 }
0x1318   :  { %v2711_v51 = vld [vmem:[#allocation3 + $0x28] sm:$0xff] }
0x1334   :  { %v2205_v53 = vpop.permute.xlu1 %2204 }
0x1335   :  { %3351 = vmatmul.mubr.msk.f32.vlgmr.msra.gmra.mrb[24].mxu1 %vm49_vm2, %v2205_v53 }
0x1336   :  { %3545 = vmatpush3.bf16.msra.mxu1 %v4160_v1  ;;  %3372 = vmatprep.mubr.msk.f32.mxu1 %vm3690_vm3, %v3691_v16 }
0x1337   :  { %3546 = vmatprep.subr.bf16.mxu1 %v3689_v13 }
0x133a   :  { %3548 = vmatpush3.bf16.msra.mxu1 %v4170_v5 }
0x133b   :  { %3555 = vmatprep.subr.bf16.mxu1 %v3689_v13 }
0x133d   :  { %3373 = vmatmul.mubr.msk.f32.vlgmr.msra.gmra.mrb[26].mxu1 %vm49_vm2, %v2205_v53 }
0x133e   :  { %3557 = vmatpush3.bf16.msra.mxu1 %v3538_v31  ;;  %3394 = vmatprep.mubr.msk.f32.mxu1 %vm3690_vm3, %v3691_v16 }
0x133f   :  { %3558 = vmatprep.subr.bf16.mxu1 %v3689_v13  ;;  %v4260_v13 = vld [vmem:[%s4380_s7] ss:$0 sm:$0xff] }
0x1342   :  { %3560 = vmatpush3.bf16.msra.mxu1 %v3541_v39 }
0x13e4   :  { %v2357_v0 = vpop.f32.mrb[22].mxu0 }
0x13e5   :  { %v2358_v1 = vadd.f32 %v4251_v61, %v2357_v0  ;;  %v3363_v2 = vpop.f32.mrb[23].mxu0  ;;  %v2854_v0 = vlaneseq }
0x13e7   :  { %2369 = vrot.lane.b32.xlu0 %v2358_v1, %s3692_s23 }
0x1408   :  { %v2274_v3 = vpop.f32.mrb[24].mxu1 }
0x1409   :  { %v3352_v4 = vpop.f32.mrb[25].mxu1  ;;  %v2275_v9 = vadd.f32 %v4260_v13, %v2274_v3 }
0x140a   :  { %v2855_v4 = vand.u32 127, %v2854_v0 }
0x140b   :  { %v2361_v10 = vadd.f32 %v2358_v1, %v2275_v9 }
0x140c   :  { %vm2856_vm5 = vcmp.ge.s32.totalorder %v2855_v4, 80  ;;  %vm2857_vm6 = vcmp.lt.s32.totalorder %v2855_v4, 100 }
0x140d   :  { %v2959_v11 = vmul.f32 -1.442695, %v2361_v10  ;;  %vm4313_vm7 = vmand %vm2856_vm5, %vm2857_vm6 }
0x140f   :  { %3655 = vpow2.f32 %v2959_v11 }
0x1410   :  { %v2472_v5 = vpop.f32.mrb[26].mxu1 }
0x1411   :  { %v2473_v6 = vadd.f32 %v4185_v17, %v2472_v5  ;;  %v3374_v16 = vpop.f32.mrb[27].mxu1  ;;  %v2394_v17 = vld [vmem:[#allocation2 + $0x38] sm:$0xff] }
0x1413   :  { %2484 = vrot.lane.b32.xlu1 %v2473_v6, %s3692_s23  ;;  %v2476_v22 = vadd.f32 %v2473_v6, %v2394_v17 }
0x1415   :  { %v2962_v7 = vmul.f32 -1.442695, %v2476_v22 }
0x1419   :  { %v3656_v12 = vpop.eup %3655 }
0x141a   :  { %v2365_v18 = vadd.f32 1.0, %v3656_v12 }
0x141c   :  { %3657 = vrcp.f32 %v2365_v18 }
0x141d   :  { %3659 = vpow2.f32 %v2962_v7 }
0x1426   :  { %v3658_v19 = vpop.eup %3657 }
0x1427   :  { %v3660_v23 = vpop.eup %3659  ;;  %v2379_v30 = vsub.f32 1.0, %v3658_v19  ;;  %v2385_v33 = vmul.f32 %v3658_v19, %v4223_v52 }
0x1428   :  { %v2480_v8 = vadd.f32 1.0, %v3660_v23 }
0x142a   :  { %3661 = vrcp.f32 %v2480_v8 }
0x1434   :  { %v3662_v54 = vpop.eup %3661 }
0x1435   :  { %v2494_v36 = vsub.f32 1.0, %v3662_v54  ;;  %v2500_v31 = vmul.f32 %v3662_v54, %v4228_v62 }
0x1459   :  { %v2370_v20 = vpop.permute.xlu0 %2369 }
0x145a   :  { %v2372_v21 = vmul.f32 %v3658_v19, %v2370_v20 }
0x145c   :  { %2374 = vrot.lane.b32.xlu0 %v2372_v21, %s3692_s23 }
0x1485   :  { %v2485_v59 = vpop.permute.xlu1 %2484 }
0x1486   :  { %v2487_v15 = vmul.f32 %v3662_v54, %v2485_v59 }
0x1488   :  { %2489 = vrot.lane.b32.xlu1 %v2487_v15, %s3692_s23 }
0x14ce   :  { %v2375_v24 = vpop.permute.xlu0 %2374 }
0x14cf   :  { %v2377_v25 = vadd.f32 %v2375_v24, %v2275_v9 }
0x14d1   :  { %3663 = vtanh.f32 %v2377_v25 }
0x14db   :  { %v3664_v50 = vpop.eup %3663 }
0x14dc   :  { %2381 = vrot.lane.b32.xlu0 %v3664_v50, %s3693_s24 }
0x14fa   :  { %v2490_v26 = vpop.permute.xlu1 %2489 }
0x14fb   :  { %v2492_v27 = vadd.f32 %v2490_v26, %v2394_v17 }
0x14fd   :  { %3665 = vtanh.f32 %v2492_v27 }
0x1507   :  { %v3666_v28 = vpop.eup %3665 }
0x1508   :  { %2496 = vrot.lane.b32.xlu1 %v3666_v28, %s3693_s24 }
0x154e   :  { %v2382_v32 = vpop.permute.xlu0 %2381 }
0x154f   :  { %v2384_v34 = vmul.f32 %v2382_v32, %v2379_v30 }
0x1551   :  { %v4274_v35 = vadd.f32 %v2385_v33, %v2384_v34 }
0x1553   :  { %2388 = vrot.lane.b32.xlu0 %v4274_v35, %s3693_s24 }
0x157a   :  { %v2497_v37 = vpop.permute.xlu1 %2496 }
0x157b   :  { %v2499_v38 = vmul.f32 %v2497_v37, %v2494_v36 }
0x157d   :  { %v2501_v39 = vadd.f32 %v2500_v31, %v2499_v38 }
0x157f   :  { %2514 = vrot.lane.b32.xlu1 %v2501_v39, %s3693_s24 }
0x15c5   :  { %v2389_v40 = vpop.permute.xlu0 %2388 }
0x15c6   :  { %2392 = vst.msk [vmem:[#allocation3 + $0x30] sm:$0xff] %vm49_vm2, %v2389_v40  ;;  %3395 = vmatmul.mubr.msk.f32.vlgmr.msra.gmra.mrb[28].mxu1 %vm49_vm2, %v2389_v40 }
0x15cd   :  { %v2712_v52 = vld [vmem:[#allocation3 + $0x30] sm:$0xff] }
0x15f1   :  { %v2515_v44 = vpop.permute.xlu1 %2514 }
0x15f2   :  { %2704 = vst.msk [vmem:[%s4374_s13] sm:$0xff] %vm49_vm2, %v2515_v44  ;;  %3384 = vmatmul.mubr.msk.f32.vlgmr.msra.gmra.mrb[24].mxu0 %vm49_vm2, %v2515_v44 }
0x15f3   :  { %3564 = vmatpush3.bf16.msra.mxu0 %v3561_v29  ;;  %3405 = vmatprep.mubr.msk.f32.mxu0 %vm49_vm2, %v2706_v45 }
0x15f4   :  { %3566 = vmatprep.subr.bf16.mxu0 %v3565_v43 }
0x15f7   :  { %3568 = vmatpush3.bf16.msra.mxu0 %v3565_v43 }
0x15fa   :  { %3406 = vmatmul.mubr.msk.f32.vlgmr.msra.gmra.mrb[26].mxu0 %vm49_vm2, %v2707_v46 }
0x15fb   :  { %3408 = vmatprep.mubr.msk.f32.mxu0 %vm49_vm2, %v2708_v47 }
0x15fe   :  { %3409 = vmatmul.mubr.msk.f32.gmra.mrb[28].mxu0 %vm49_vm2, %v2709_v48 }
0x15ff   :  { %3411 = vmatprep.mubr.msk.f32.mxu0 %vm49_vm2, %v2710_v49 }
0x1602   :  { %3412 = vmatmul.mubr.msk.f32.gmra.mrb[30].mxu0 %vm49_vm2, %v2711_v51 }
0x1603   :  { %3414 = vmatprep.mubr.msk.f32.mxu0 %vm49_vm2, %v2712_v52 }
0x1699   :  { %v2667_v55 = vpop.f32.mrb[28].mxu1 }
0x169a   :  { %v2668_v56 = vadd.f32 %v4251_v61, %v2667_v55  ;;  %v3396_v57 = vpop.f32.mrb[29].mxu1 }
0x169c   :  { %2679 = vrot.lane.b32.xlu0 %v2668_v56, %s3692_s23 }
0x16c5   :  { %v2584_v60 = vpop.f32.mrb[24].mxu0 }
0x16c6   :  { %v3385_v62 = vpop.f32.mrb[25].mxu0  ;;  %v2585_v25 = vadd.f32 %v4260_v13, %v2584_v60 }
0x16c8   :  { %v2671_v50 = vadd.f32 %v2668_v56, %v2585_v25 }
0x16ca   :  { %v2967_v26 = vmul.f32 -1.442695, %v2671_v50 }
0x16cd   :  { %v3407_v53 = vpop.f32.mrb[26].mxu0 }
0x16ce   :  { %v2821_v1 = vadd.f32 %v3407_v53, %v4305_v63  ;;  %v2815_v2 = vpop.f32.mrb[27].mxu0 }
0x16cf   :  { %v2816_v3 = vadd.f32 %v4305_v63, %v2815_v2 }
0x16d0   :  { %3667 = vtanh.f32 %v2821_v1 }
0x16d1   :  { %3669 = vtanh.f32 %v2816_v3  ;;  %v3410_v61 = vpop.f32.mrb[28].mxu0 }
0x16d2   :  { %v2831_v5 = vadd.f32 %v3410_v61, %v4305_v63  ;;  %v2825_v6 = vpop.f32.mrb[29].mxu0 }
0x16d3   :  { %v2826_v16 = vadd.f32 %v4305_v63, %v2825_v6 }
0x16d4   :  { %3671 = vtanh.f32 %v2831_v5 }
0x16d5   :  { %3673 = vtanh.f32 %v2826_v16  ;;  %v3413_v9 = vpop.f32.mrb[30].mxu0 }
0x16d6   :  { %v2841_v10 = vadd.f32 %v3413_v9, %v4305_v63  ;;  %v2835_v11 = vpop.f32.mrb[31].mxu0 }
0x16d7   :  { %v2836_v12 = vadd.f32 %v4305_v63, %v2835_v11 }
0x16d8   :  { %3675 = vtanh.f32 %v2841_v10 }
0x16d9   :  { %3677 = vtanh.f32 %v2836_v12 }
0x16da   :  { %v3668_v19 = vpop.eup %3667  ;;  %3679 = vpow2.f32 %v2967_v26 }
0x16db   :  { %v3670_v20 = vpop.eup %3669  ;;  %v2870_v21 = vsel %vm4313_vm7, %v3668_v19, %v2821_v1 }
0x16dc   :  { %2878 = vst [vmem:[%s4383_s12 + $0x8] sm:$0xff] %v2870_v21  ;;  %v2869_v17 = vsel %vm4313_vm7, %v3670_v20, %v2816_v3 }
0x16dd   :  { %2877 = vst [vmem:[%s4383_s12] sm:$0xff] %v2869_v17 }
0x16de   :  { %v3672_v22 = vpop.eup %3671 }
0x16df   :  { %v3674_v7 = vpop.eup %3673  ;;  %v2872_v23 = vsel %vm4313_vm7, %v3672_v22, %v2831_v5 }
0x16e0   :  { %2880 = vst [vmem:[%s4383_s12 + $0x18] sm:$0xff] %v2872_v23  ;;  %v2871_v8 = vsel %vm4313_vm7, %v3674_v7, %v2826_v16 }
0x16e1   :  { %2879 = vst [vmem:[%s4383_s12 + $0x10] sm:$0xff] %v2871_v8 }
0x16e2   :  { %v3676_v54 = vpop.eup %3675 }
0x16e3   :  { %v2874_v59 = vsel %vm4313_vm7, %v3676_v54, %v2841_v10  ;;  %v3678_v15 = vpop.eup %3677 }
0x16e4   :  { %2882 = vst [vmem:[%s4383_s12 + $0x28] sm:$0xff] %v2874_v59  ;;  %v2873_v24 = vsel %vm4313_vm7, %v3678_v15, %v2836_v12  ;;  %v3680_v27 = vpop.eup %3679 }
0x16e5   :  { %2881 = vst [vmem:[%s4383_s12 + $0x20] sm:$0xff] %v2873_v24  ;;  %v2675_v28 = vadd.f32 1.0, %v3680_v27 }
0x16e7   :  { %3681 = vrcp.f32 %v2675_v28 }
0x16f1   :  { %v3682_v14 = vpop.eup %3681 }
0x16f2   :  { %v2689_v34 = vsub.f32 1.0, %v3682_v14  ;;  %v2695_v13 = vmul.f32 %v3682_v14, %v4274_v35 }
0x170e   :  { %v2680_v58 = vpop.permute.xlu0 %2679 }
0x170f   :  { %v2682_v29 = vmul.f32 %v3682_v14, %v2680_v58 }
0x1711   :  { %2684 = vrot.lane.b32.xlu1 %v2682_v29, %s3692_s23 }
0x1783   :  { %v2685_v30 = vpop.permute.xlu1 %2684 }
0x1784   :  { %v2687_v32 = vadd.f32 %v2685_v30, %v2585_v25 }
0x1786   :  { %3683 = vtanh.f32 %v2687_v32 }
0x1790   :  { %v3684_v33 = vpop.eup %3683 }
0x1791   :  { %2691 = vrot.lane.b32.xlu0 %v3684_v33, %s3693_s24 }
0x1803   :  { %v2692_v36 = vpop.permute.xlu0 %2691 }
0x1804   :  { %v2694_v37 = vmul.f32 %v2692_v36, %v2689_v34 }
0x1806   :  { %v2696_v31 = vadd.f32 %v2695_v13, %v2694_v37 }
0x1808   :  { %2698 = vrot.lane.b32.xlu1 %v2696_v31, %s3693_s24 }
0x187a   :  { %v2699_v38 = vpop.permute.xlu1 %2698 }
0x187b   :  { %2702 = vst.msk [vmem:[#allocation3 + $0x38] sm:$0xff] %vm49_vm2, %v2699_v38  ;;  %2968 = vst.msk [vmem:[%s4374_s13 + $0x8] sm:$0xff] %vm49_vm2, %v2699_v38 }
0x1882   :  { %v2713_v39 = vld [vmem:[#allocation3 + $0x38] sm:$0xff] }
0x1883   :  { %3415 = vmatmul.mubr.msk.f32.gmra.mrb[32].mxu0 %vm49_vm2, %v2713_v39 }
0x1956   :  { %v3416_v40 = vpop.f32.mrb[32].mxu0 }
0x1957   :  { %v2851_v41 = vadd.f32 %v3416_v40, %v4305_v63  ;;  %v2845_v42 = vpop.f32.mrb[33].mxu0 }
0x1958   :  { %v2846_v35 = vadd.f32 %v4305_v63, %v2845_v42 }
0x1959   :  { %3685 = vtanh.f32 %v2851_v41 }
0x195a   :  { %3687 = vtanh.f32 %v2846_v35 }
0x1963   :  { %v3686_v43 = vpop.eup %3685 }
0x1964   :  { %v3688_v44 = vpop.eup %3687  ;;  %v2876_v45 = vsel %vm4313_vm7, %v3686_v43, %v2851_v41 }
0x1965   :  { %2884 = vst [vmem:[%s4383_s12 + $0x38] sm:$0xff] %v2876_v45  ;;  %v2875_v46 = vsel %vm4313_vm7, %v3688_v44, %v2846_v35 }
0x1966   :  { %2883 = vst [vmem:[%s4383_s12 + $0x30] sm:$0xff] %v2875_v46 }

</bundles_post_ra>
